<compile_context>
chip_gen: v5e
topology: v5e:2x2
jax: 0.10.0
libtpu: 0.0.40
codegen_flags: <defaults>
</compile_context>

<pallas_src>
import jax
import jax.numpy as jnp
from jax.experimental import pallas as pl
from jax.experimental.pallas import tpu as pltpu


# ----------------------------------------------------------------------------
# Fused 4-hop kernel: four chained MXU matmuls, intermediates stay on-core.
# ----------------------------------------------------------------------------
def _fused_hops_kernel(p_ref, w1_ref, w2_ref, w3_ref, w4_ref,
                       o1_ref, o2_ref, o3_ref, o4_ref):
    # p_ref: (1, rows, 256*Cin) bf16.  w*_ref: resident bf16 block-diag mats.
    # o*_ref: (1, rows, 256) f32, lane-dense.
    p = p_ref[0]
    f1 = jnp.dot(p, w1_ref[...], preferred_element_type=jnp.float32)
    o1_ref[0] = f1
    f2 = jnp.dot(f1.astype(jnp.bfloat16), w2_ref[...],
                 preferred_element_type=jnp.float32)
    o2_ref[0] = f2
    f3 = jnp.dot(f2.astype(jnp.bfloat16), w3_ref[...],
                 preferred_element_type=jnp.float32)
    o3_ref[0] = f3
    f4 = jnp.dot(f3.astype(jnp.bfloat16), w4_ref[...],
                 preferred_element_type=jnp.float32)
    o4_ref[0] = f4


def fused_pixelhop_call(p1, w1, w2, w3, w4):
    """p1: (G, rows, K1) bf16; w1: (K1, 256) bf16; w2..w4: (256, 256) bf16.
    Returns four (G, rows, 256) f32 hop-output slabs."""
    G, rows, K1 = p1.shape
    M = w1.shape[1]

    def _w_spec(w):
        # Constant block index -> weight DMA'd once and kept VMEM-resident.
        return pl.BlockSpec(w.shape, lambda g: (0, 0))

    row_in = pl.BlockSpec((1, rows, K1), lambda g: (g, 0, 0))
    row_out = pl.BlockSpec((1, rows, M), lambda g: (g, 0, 0))

    return pl.pallas_call(
        _fused_hops_kernel,
        out_shape=tuple(jax.ShapeDtypeStruct((G, rows, M), jnp.float32)
                        for _ in range(4)),
        grid_spec=pltpu.PrefetchScalarGridSpec(
            num_scalar_prefetch=0,
            grid=(G,),
            in_specs=[row_in, _w_spec(w1), _w_spec(w2), _w_spec(w3),
                      _w_spec(w4)],
            out_specs=(row_out, row_out, row_out, row_out),
        ),
        compiler_params=pltpu.CompilerParams(
            dimension_semantics=("parallel",),
        ),
    )(p1, w1, w2, w3, w4)


# ----------------------------------------------------------------------------
# One-time boundary layout glue (plain JAX, raw input / final outputs only)
# ----------------------------------------------------------------------------
def _num_row_groups(B, rows_per_image, max_rows=512):
    total = B * rows_per_image
    g = max(1, -(-total // max_rows))    # cap rows per grid step
    if total >= 2:
        g = max(g, 2)                    # >=2 parallel steps -> v7x megacore
    g = min(g, total)
    while total % g:                     # equal-sized groups, no padding
        g -= 1
    return g


def _morton_patch_rows(x_nchw):
    """(B, C, H, W) -> (B, (H//16)*(W//16), 256*C).

    Each row holds one 16x16 input tile in Morton/quad-tree order:
    columns = (q3, q2, q1, kh, kw, c) with q_k the 2x2 position inside the
    hop-(k+1) window.  This makes every hop's 2x2/stride-2 window a contiguous
    column group, so all hops are plain matmuls with no inter-hop reshapes."""
    B, C, H, W = x_nchw.shape
    assert H % 16 == 0 and W % 16 == 0, "4 hops of 2x2/stride-2 need H,W%16==0"
    H4, W4 = H // 16, W // 16
    x = jnp.transpose(x_nchw, (0, 2, 3, 1))                       # NHWC
    x = x.reshape(B, H4, 2, 2, 2, 2, W4, 2, 2, 2, 2, C)
    #              0  1   2  3  4  5   6  7  8  9 10 11
    #                 h4 a2 a1 a0 kh  w4 b2 b1 b0 kw  c
    x = jnp.transpose(x, (0, 1, 6, 2, 7, 3, 8, 4, 9, 5, 10, 11))
    return x.reshape(B, H4 * W4, 256 * C)


def _hop1_big_weight(w1_t):
    """Torch conv weight (O, Cin, 2, 2) -> block-diagonal (64*4*Cin, 64*O)
    matching the Morton column order (window-major, (kh,kw,c) inside)."""
    O = w1_t.shape[0]
    blk = jnp.transpose(w1_t, (2, 3, 1, 0)).reshape(-1, O)        # (4*Cin, O)
    return jnp.kron(jnp.eye(64, dtype=w1_t.dtype), blk)


def _cw_big_weight(w_g, total_cols=256):
    """Channel-wise Saab filters (G, 4, 1, 2, 2) -> block-diagonal matmul
    weight (total_cols_in, total_cols).  Per-window block is (4G, 4G) with
    rows ordered (j = kh*2+kw, parent channel c) and cols (c, m)."""
    G = w_g.shape[0]
    w = w_g.reshape(G, 4, 4)                                      # (c, m, j)
    blk = jnp.einsum("cmj,cd->jcdm", w,
                     jnp.eye(G, dtype=w_g.dtype)).reshape(4 * G, 4 * G)
    n_rep = total_cols // (4 * G)
    return jnp.kron(jnp.eye(n_rep, dtype=w_g.dtype), blk)


# ----------------------------------------------------------------------------
# Parameter initialization (deterministic, synthetic Saab filters)
# ----------------------------------------------------------------------------
def init_params(key):
    k1, k2, k3, k4 = jax.random.split(key, 4)
    w1 = jax.random.normal(k1, (4, 3, 2, 2), jnp.float32) * 0.2      # hop1
    w2 = jax.random.normal(k2, (4, 4, 1, 2, 2), jnp.float32) * 0.2   # 4 cw
    w3 = jax.random.normal(k3, (16, 4, 1, 2, 2), jnp.float32) * 0.2  # 16 cw
    w4 = jax.random.normal(k4, (64, 4, 1, 2, 2), jnp.float32) * 0.2  # 64 cw
    return {
        # bf16 block-diagonal matmul weights used by the fused Pallas kernel
        "w1b": _hop1_big_weight(w1).astype(jnp.bfloat16),
        "w2b": _cw_big_weight(w2).astype(jnp.bfloat16),
        "w3b": _cw_big_weight(w3).astype(jnp.bfloat16),
        "w4b": _cw_big_weight(w4).astype(jnp.bfloat16),
        # torch-layout f32 weights kept only for the lax.conv reference check
        "w1_t": w1, "w2_t": w2, "w3_t": w3, "w4_t": w4,
    }


# ----------------------------------------------------------------------------
# Forward pass (matches PixelHopPlusPlus.forward in eval mode)
# ----------------------------------------------------------------------------
def pixelhop_forward(x_nchw, params):
    B, C, H, W = x_nchw.shape
    H4, W4 = H // 16, W // 16
    R = H4 * W4

    p1 = _morton_patch_rows(x_nchw).astype(jnp.bfloat16)          # (B, R, 256C)
    G = _num_row_groups(B, R)
    p1 = p1.reshape(G, (B * R) // G, 256 * C)

    f1, f2, f3, f4 = fused_pixelhop_call(
        p1, params["w1b"], params["w2b"], params["w3b"], params["w4b"])

    # Output-boundary layout plumbing: lane-dense slabs -> NCHW hop outputs.
    f1 = f1.reshape(B, H4, W4, 2, 2, 2, 2, 2, 2, 4)
    out1 = jnp.transpose(f1, (0, 9, 1, 3, 5, 7, 2, 4, 6, 8)).reshape(
        B, 4, H // 2, W // 2)

    f2 = f2.reshape(B, H4, W4, 2, 2, 2, 2, 16)
    c2 = jnp.transpose(f2, (0, 7, 1, 3, 5, 2, 4, 6)).reshape(
        B, 16, H // 4, W // 4)

    f3 = f3.reshape(B, H4, W4, 2, 2, 64)
    c3 = jnp.transpose(f3, (0, 5, 1, 3, 2, 4)).reshape(B, 64, H // 8, W // 8)

    f4 = f4.reshape(B, H4, W4, 256)
    c4 = jnp.transpose(f4, (0, 3, 1, 2)).reshape(B, 256, H // 16, W // 16)

    output2 = [c2[:, 4 * i:4 * i + 4] for i in range(4)]
    output3 = [[c3[:, 16 * i + 4 * j:16 * i + 4 * j + 4] for j in range(4)]
               for i in range(4)]
    output4 = [[[c4[:, 64 * i + 16 * j + 4 * k:64 * i + 16 * j + 4 * k + 4]
                 for k in range(4)] for j in range(4)] for i in range(4)]
    return out1, output2, output3, output4


# ----------------------------------------------------------------------------
# Reference implementation (true f32 lax.conv) for a full numeric check
# ----------------------------------------------------------------------------
def _ref_conv(x, w):
    return jax.lax.conv_general_dilated(
        x, w, window_strides=(2, 2), padding="VALID",
        dimension_numbers=("NCHW", "OIHW", "NCHW"),
        precision=jax.lax.Precision.HIGHEST)


def ref_forward(x, params):
    o1 = _ref_conv(x, params["w1_t"])
    o2 = [_ref_conv(o1[:, i:i + 1], params["w2_t"][i]) for i in range(4)]
    o3 = [[_ref_conv(o2[i][:, j:j + 1], params["w3_t"][4 * i + j])
           for j in range(4)] for i in range(4)]
    o4 = [[[_ref_conv(o3[i][j][:, k:k + 1], params["w4_t"][16 * i + 4 * j + k])
            for k in range(4)] for j in range(4)] for i in range(4)]
    return o1, o2, o3, o4


if __name__ == "__main__":
    key = jax.random.PRNGKey(0)
    kx, kw = jax.random.split(key)

    B, C, H, W = 2, 3, 32, 32          # 4 hops of stride-2 -> final 2x2 maps
    x = jax.random.uniform(kx, (B, C, H, W), jnp.float32)
    params = init_params(kw)

    fwd = jax.jit(pixelhop_forward)
    out1, out2, out3, out4 = jax.block_until_ready(fwd(x, params))

    # shape sanity
    assert out1.shape == (B, 4, H // 2, W // 2)
    assert len(out2) == 4 and out2[0].shape == (B, 4, H // 4, W // 4)
    assert len(out3) == 4 and out3[0][0].shape == (B, 4, H // 8, W // 8)
    assert out4[3][3][3].shape == (B, 4, H // 16, W // 16)

    # Numeric check vs true-f32 (HIGHEST precision) conv reference.
    # Accuracy contract: kernel uses bf16 operands with f32 accumulation.
    r1, r2, r3, r4 = jax.block_until_ready(jax.jit(ref_forward)(x, params))
    tol = dict(rtol=3e-2, atol=3e-2)
    assert jnp.allclose(out1, r1, **tol)
    for i in range(4):
        assert jnp.allclose(out2[i], r2[i], **tol)
        for j in range(4):
            assert jnp.allclose(out3[i][j], r3[i][j], **tol)
            for k in range(4):
                assert jnp.allclose(out4[i][j][k], r4[i][j][k], **tol)

    print("KERNEL_OK")
</pallas_src>

<mosaic_0001>
module attributes {stable_mosaic.version = 11 : i64} {
  func.func @_fused_hops_kernel(%arg0: i32, %arg1: memref<1x4x768xbf16, #tpu.memory_space<vmem>>, %arg2: memref<768x256xbf16, #tpu.memory_space<vmem>>, %arg3: memref<256x256xbf16, #tpu.memory_space<vmem>>, %arg4: memref<256x256xbf16, #tpu.memory_space<vmem>>, %arg5: memref<256x256xbf16, #tpu.memory_space<vmem>>, %arg6: memref<1x4x256xf32, #tpu.memory_space<vmem>>, %arg7: memref<1x4x256xf32, #tpu.memory_space<vmem>>, %arg8: memref<1x4x256xf32, #tpu.memory_space<vmem>>, %arg9: memref<1x4x256xf32, #tpu.memory_space<vmem>>) attributes {dimension_semantics = [#tpu.dimension_semantics<parallel>], iteration_bounds = array<i64: 2>, scalar_prefetch = 0 : i64, scratch_operands = 0 : i64, tpu.core_type = #tpu.core_type<tc>, window_params = [{transform_indices = @transform_0, window_bounds = array<i64: 1, 4, 768>}, {pipeline_mode = #tpu.pipeline_mode<synchronous>, transform_indices = @transform_1, window_bounds = array<i64: 768, 256>}, {pipeline_mode = #tpu.pipeline_mode<synchronous>, transform_indices = @transform_2, window_bounds = array<i64: 256, 256>}, {pipeline_mode = #tpu.pipeline_mode<synchronous>, transform_indices = @transform_3, window_bounds = array<i64: 256, 256>}, {pipeline_mode = #tpu.pipeline_mode<synchronous>, transform_indices = @transform_4, window_bounds = array<i64: 256, 256>}, {transform_indices = @transform_5, window_bounds = array<i64: 1, 4, 256>}, {transform_indices = @transform_6, window_bounds = array<i64: 1, 4, 256>}, {transform_indices = @transform_7, window_bounds = array<i64: 1, 4, 256>}, {transform_indices = @transform_8, window_bounds = array<i64: 1, 4, 256>}]} {
    %c0 = arith.constant 0 : index
    %c0_0 = arith.constant 0 : index
    %c0_1 = arith.constant 0 : index
    %0 = vector.load %arg1[%c0, %c0_0, %c0_1] : memref<1x4x768xbf16, #tpu.memory_space<vmem>>, vector<1x4x768xbf16>
    %1 = vector.shape_cast %0 : vector<1x4x768xbf16> to vector<4x768xbf16>
    %c0_2 = arith.constant 0 : index
    %c0_3 = arith.constant 0 : index
    %2 = vector.load %arg2[%c0_2, %c0_3] : memref<768x256xbf16, #tpu.memory_space<vmem>>, vector<768x256xbf16>
    %cst = arith.constant dense<0.000000e+00> : vector<4x256xf32>
    %3 = tpu.matmul %1, %2, %cst {dimension_numbers = #tpu.dot_dimension_numbers<[1], [0], [0], [1], [0, 0, 1, 1], [], []>} : vector<4x768xbf16>, vector<768x256xbf16>, vector<4x256xf32> -> vector<4x256xf32>
    %c0_4 = arith.constant 0 : index
    %c0_5 = arith.constant 0 : index
    %c0_6 = arith.constant 0 : index
    %4 = vector.load %arg6[%c0_4, %c0_5, %c0_6] : memref<1x4x256xf32, #tpu.memory_space<vmem>>, vector<1x4x256xf32>
    %5 = vector.shape_cast %4 : vector<1x4x256xf32> to vector<4x256xf32>
    %6 = vector.shape_cast %3 : vector<4x256xf32> to vector<1x4x256xf32>
    tpu.vector_store %arg6[%c0_4, %c0_5, %c0_6], %6 {strides = array<i32>} : memref<1x4x256xf32, #tpu.memory_space<vmem>>, vector<1x4x256xf32>,
    %7 = arith.truncf %3 : vector<4x256xf32> to vector<4x256xbf16>
    %c0_7 = arith.constant 0 : index
    %c0_8 = arith.constant 0 : index
    %8 = vector.load %arg3[%c0_7, %c0_8] : memref<256x256xbf16, #tpu.memory_space<vmem>>, vector<256x256xbf16>
    %cst_9 = arith.constant dense<0.000000e+00> : vector<4x256xf32>
    %9 = tpu.matmul %7, %8, %cst_9 {dimension_numbers = #tpu.dot_dimension_numbers<[1], [0], [0], [1], [0, 0, 1, 1], [], []>} : vector<4x256xbf16>, vector<256x256xbf16>, vector<4x256xf32> -> vector<4x256xf32>
    %c0_10 = arith.constant 0 : index
    %c0_11 = arith.constant 0 : index
    %c0_12 = arith.constant 0 : index
    %10 = vector.load %arg7[%c0_10, %c0_11, %c0_12] : memref<1x4x256xf32, #tpu.memory_space<vmem>>, vector<1x4x256xf32>
    %11 = vector.shape_cast %10 : vector<1x4x256xf32> to vector<4x256xf32>
    %12 = vector.shape_cast %9 : vector<4x256xf32> to vector<1x4x256xf32>
    tpu.vector_store %arg7[%c0_10, %c0_11, %c0_12], %12 {strides = array<i32>} : memref<1x4x256xf32, #tpu.memory_space<vmem>>, vector<1x4x256xf32>,
    %13 = arith.truncf %9 : vector<4x256xf32> to vector<4x256xbf16>
    %c0_13 = arith.constant 0 : index
    %c0_14 = arith.constant 0 : index
    %14 = vector.load %arg4[%c0_13, %c0_14] : memref<256x256xbf16, #tpu.memory_space<vmem>>, vector<256x256xbf16>
    %cst_15 = arith.constant dense<0.000000e+00> : vector<4x256xf32>
    %15 = tpu.matmul %13, %14, %cst_15 {dimension_numbers = #tpu.dot_dimension_numbers<[1], [0], [0], [1], [0, 0, 1, 1], [], []>} : vector<4x256xbf16>, vector<256x256xbf16>, vector<4x256xf32> -> vector<4x256xf32>
    %c0_16 = arith.constant 0 : index
    %c0_17 = arith.constant 0 : index
    %c0_18 = arith.constant 0 : index
    %16 = vector.load %arg8[%c0_16, %c0_17, %c0_18] : memref<1x4x256xf32, #tpu.memory_space<vmem>>, vector<1x4x256xf32>
    %17 = vector.shape_cast %16 : vector<1x4x256xf32> to vector<4x256xf32>
    %18 = vector.shape_cast %15 : vector<4x256xf32> to vector<1x4x256xf32>
    tpu.vector_store %arg8[%c0_16, %c0_17, %c0_18], %18 {strides = array<i32>} : memref<1x4x256xf32, #tpu.memory_space<vmem>>, vector<1x4x256xf32>,
    %19 = arith.truncf %15 : vector<4x256xf32> to vector<4x256xbf16>
    %c0_19 = arith.constant 0 : index
    %c0_20 = arith.constant 0 : index
    %20 = vector.load %arg5[%c0_19, %c0_20] : memref<256x256xbf16, #tpu.memory_space<vmem>>, vector<256x256xbf16>
    %cst_21 = arith.constant dense<0.000000e+00> : vector<4x256xf32>
    %21 = tpu.matmul %19, %20, %cst_21 {dimension_numbers = #tpu.dot_dimension_numbers<[1], [0], [0], [1], [0, 0, 1, 1], [], []>} : vector<4x256xbf16>, vector<256x256xbf16>, vector<4x256xf32> -> vector<4x256xf32>
    %c0_22 = arith.constant 0 : index
    %c0_23 = arith.constant 0 : index
    %c0_24 = arith.constant 0 : index
    %22 = vector.load %arg9[%c0_22, %c0_23, %c0_24] : memref<1x4x256xf32, #tpu.memory_space<vmem>>, vector<1x4x256xf32>
    %23 = vector.shape_cast %22 : vector<1x4x256xf32> to vector<4x256xf32>
    %24 = vector.shape_cast %21 : vector<4x256xf32> to vector<1x4x256xf32>
    tpu.vector_store %arg9[%c0_22, %c0_23, %c0_24], %24 {strides = array<i32>} : memref<1x4x256xf32, #tpu.memory_space<vmem>>, vector<1x4x256xf32>,
    return
  }
  func.func @transform_0(%arg0: i32) -> (i32, i32, i32) {
    %c0_i32 = arith.constant 0 : i32
    %c0_i32_0 = arith.constant 0 : i32
    %c0_i32_1 = arith.constant 0 : i32
    return %arg0, %c0_i32, %c0_i32_0 : i32, i32, i32
  }
  func.func @transform_1(%arg0: i32) -> (i32, i32) {
    %c0_i32 = arith.constant 0 : i32
    %c0_i32_0 = arith.constant 0 : i32
    %c0_i32_1 = arith.constant 0 : i32
    return %c0_i32, %c0_i32_0 : i32, i32
  }
  func.func @transform_2(%arg0: i32) -> (i32, i32) {
    %c0_i32 = arith.constant 0 : i32
    %c0_i32_0 = arith.constant 0 : i32
    %c0_i32_1 = arith.constant 0 : i32
    return %c0_i32, %c0_i32_0 : i32, i32
  }
  func.func @transform_3(%arg0: i32) -> (i32, i32) {
    %c0_i32 = arith.constant 0 : i32
    %c0_i32_0 = arith.constant 0 : i32
    %c0_i32_1 = arith.constant 0 : i32
    return %c0_i32, %c0_i32_0 : i32, i32
  }
  func.func @transform_4(%arg0: i32) -> (i32, i32) {
    %c0_i32 = arith.constant 0 : i32
    %c0_i32_0 = arith.constant 0 : i32
    %c0_i32_1 = arith.constant 0 : i32
    return %c0_i32, %c0_i32_0 : i32, i32
  }
  func.func @transform_5(%arg0: i32) -> (i32, i32, i32) {
    %c0_i32 = arith.constant 0 : i32
    %c0_i32_0 = arith.constant 0 : i32
    %c0_i32_1 = arith.constant 0 : i32
    return %arg0, %c0_i32, %c0_i32_0 : i32, i32, i32
  }
  func.func @transform_6(%arg0: i32) -> (i32, i32, i32) {
    %c0_i32 = arith.constant 0 : i32
    %c0_i32_0 = arith.constant 0 : i32
    %c0_i32_1 = arith.constant 0 : i32
    return %arg0, %c0_i32, %c0_i32_0 : i32, i32, i32
  }
  func.func @transform_7(%arg0: i32) -> (i32, i32, i32) {
    %c0_i32 = arith.constant 0 : i32
    %c0_i32_0 = arith.constant 0 : i32
    %c0_i32_1 = arith.constant 0 : i32
    return %arg0, %c0_i32, %c0_i32_0 : i32, i32, i32
  }
  func.func @transform_8(%arg0: i32) -> (i32, i32, i32) {
    %c0_i32 = arith.constant 0 : i32
    %c0_i32_0 = arith.constant 0 : i32
    %c0_i32_1 = arith.constant 0 : i32
    return %arg0, %c0_i32, %c0_i32_0 : i32, i32, i32
  }
}

</mosaic_0001>

<bundles_post_ra>
// kernel: pixelhop_forward.1
= control target key start
LH: loop header
LB: loop body
LE: loop exit
PB: predicated region body
PF: predicated region fallthrough
CT: control target
= control target key end

     0   :  { %s3053_s27 = smov 0   ;;  %s4283_s0 = inlined_call_operand.vmem [shape: bf16[2,4,768], index: 0, kind: input, shape index: {}]   ;;  %s4284_s1 = inlined_call_operand.vmem [shape: bf16[768,256], index: 1, kind: input, shape index: {}]   ;;  %s4285_s2 = inlined_call_operand.vmem [shape: bf16[256,256], index: 2, kind: input, shape index: {}]   ;;  %s4286_s3 = inlined_call_operand.vmem [shape: bf16[256,256], index: 3, kind: input, shape index: {}]   ;;  %s4287_s4 = inlined_call_operand.vmem [shape: bf16[256,256], index: 4, kind: input, shape index: {}]   ;;  %s4288_s5 = inlined_call_operand.vmem [shape: f32[2,4,256], index: 5, kind: output, shape index: {0}]   ;;  %s4289_s6 = inlined_call_operand.vmem [shape: f32[2,4,256], index: 6, kind: output, shape index: {1}]   ;;  %s4290_s7 = inlined_call_operand.vmem [shape: f32[2,4,256], index: 7, kind: output, shape index: {2}]   ;;  %s4291_s8 = inlined_call_operand.vmem [shape: f32[2,4,256], index: 8, kind: output, shape index: {3}]  }
   0x1 LB: > { %s2011_s28 = sadd.s32 4294967295, %s3006_s27   ;;  %p2015_p0 = scmp.ge.s32.totalorder %s3006_s27, 1  ;;  %s3006_s27 = sphi %s3053_s27, %s19_s27  }
   0x2   : > { %p269_p1 = scmp.lt.s32.totalorder %s3006_s27, 3 }
   0x4   : > { %p270_p2 = pnand %p2015_p0, %p269_p1 }
   0x5   : > { %p318_p3 = scmp.lt.s32.totalorder (!%p270_p2), %s2011_s28, 1 }
   0x6   : > { %273 = sbr.rel (%p270_p2) target bundleno = 661 (0x295), region = 40 }
   0xb   : > { %v2083_v0 = vld [vmem:[%s4284_s1 + $0x70] sm:$0xf]  ;;  %v2814_v1 = vld [vmem:[%s4284_s1 + $0x74] sm:$0xf0]  ;;  %v2075_v11 = vld [vmem:[%s4284_s1 + $0x60] sm:$0xf] }
   0xc   : > { %v2147_v2 = vld [vmem:[%s4284_s1 + $0xf0] sm:$0xf]  ;;  %v2084_v3 = vor.u32 %v2814_v1, %v2083_v0  ;;  %v2830_v4 = vld [vmem:[%s4284_s1 + $0xf4] sm:$0xf0]  ;;  %v2812_v13 = vld [vmem:[%s4284_s1 + $0x64] sm:$0xf0] }
   0xd   : > { %v2211_v5 = vld [vmem:[%s4284_s1 + $0x170] sm:$0xf]  ;;  %v2846_v6 = vld [vmem:[%s4284_s1 + $0x174] sm:$0xf0]  ;;  %v2148_v7 = vor.u32 %v2830_v4, %v2147_v2  ;;  %v2139_v14 = vld [vmem:[%s4284_s1 + $0xe0] sm:$0xf]  ;;  %v2076_v16 = vor.u32 %v2812_v13, %v2075_v11 }
   0xe   : > { %v2212_v8 = vor.u32 %v2846_v6, %v2211_v5  ;;  %v2275_v9 = vld [vmem:[%s4284_s1 + $0x1f0] sm:$0xf]  ;;  %v2862_v10 = vld [vmem:[%s4284_s1 + $0x1f4] sm:$0xf0]  ;;  %938 = vmatpush.bf16.msra.mxu0 %v2084_v3  ;;  %v2828_v15 = vld [vmem:[%s4284_s1 + $0xe4] sm:$0xf0] }
   0xf   : > { %v2276_v12 = vor.u32 %v2862_v10, %v2275_v9  ;;  %951 = vmatpush.bf16.msra.mxu1 %v2148_v7  ;;  %v2140_v17 = vor.u32 %v2828_v15, %v2139_v14  ;;  %v2203_v18 = vld [vmem:[%s4284_s1 + $0x160] sm:$0xf]  ;;  %v2844_v19 = vld [vmem:[%s4284_s1 + $0x164] sm:$0xf0]  ;;  %v2067_v23 = vld [vmem:[%s4284_s1 + $0x50] sm:$0xf] }
  0x10   : > { %964 = vmatpush.bf16.msra.mxu2 %v2212_v8  ;;  %v2267_v20 = vld [vmem:[%s4284_s1 + $0x1e0] sm:$0xf]  ;;  %v2204_v21 = vor.u32 %v2844_v19, %v2203_v18  ;;  %v2860_v22 = vld [vmem:[%s4284_s1 + $0x1e4] sm:$0xf0]  ;;  %v2810_v24 = vld [vmem:[%s4284_s1 + $0x54] sm:$0xf0] }
  0x11   : > { %977 = vmatpush.bf16.msra.mxu3 %v2276_v12  ;;  %v2268_v25 = vor.u32 %v2860_v22, %v2267_v20  ;;  %v2131_v26 = vld [vmem:[%s4284_s1 + $0xd0] sm:$0xf]  ;;  %v2826_v27 = vld [vmem:[%s4284_s1 + $0xd4] sm:$0xf0]  ;;  %v2068_v29 = vor.u32 %v2810_v24, %v2067_v23  ;;  %v2059_v35 = vld [vmem:[%s4284_s1 + $0x40] sm:$0xf] }
  0x12   : > { %v2195_v28 = vld [vmem:[%s4284_s1 + $0x150] sm:$0xf]  ;;  %939 = vmatpush.bf16.msra.mxu0 %v2076_v16  ;;  %v2842_v30 = vld [vmem:[%s4284_s1 + $0x154] sm:$0xf0]  ;;  %v2132_v33 = vor.u32 %v2826_v27, %v2131_v26  ;;  %v2808_v36 = vld [vmem:[%s4284_s1 + $0x44] sm:$0xf0] }
  0x13   : > { %v2259_v31 = vld [vmem:[%s4284_s1 + $0x1d0] sm:$0xf]  ;;  %v2858_v32 = vld [vmem:[%s4284_s1 + $0x1d4] sm:$0xf0]  ;;  %952 = vmatpush.bf16.msra.mxu1 %v2140_v17  ;;  %v2196_v34 = vor.u32 %v2842_v30, %v2195_v28  ;;  %v2123_v37 = vld [vmem:[%s4284_s1 + $0xc0] sm:$0xf]  ;;  %v2060_v44 = vor.u32 %v2808_v36, %v2059_v35 }
  0x14   : > { %965 = vmatpush.bf16.msra.mxu2 %v2204_v21  ;;  %v2260_v38 = vor.u32 %v2858_v32, %v2259_v31  ;;  %v2824_v39 = vld [vmem:[%s4284_s1 + $0xc4] sm:$0xf0]  ;;  %v2187_v40 = vld [vmem:[%s4284_s1 + $0x140] sm:$0xf]  ;;  %v2051_v47 = vld [vmem:[%s4284_s1 + $0x30] sm:$0xf] }
  0x15   : > { %978 = vmatpush.bf16.msra.mxu3 %v2268_v25  ;;  %v2840_v41 = vld [vmem:[%s4284_s1 + $0x144] sm:$0xf0]  ;;  %v2251_v42 = vld [vmem:[%s4284_s1 + $0x1c0] sm:$0xf]  ;;  %v2124_v45 = vor.u32 %v2824_v39, %v2123_v37  ;;  %v2806_v48 = vld [vmem:[%s4284_s1 + $0x34] sm:$0xf0] }
  0x16   : > { %v2856_v43 = vld [vmem:[%s4284_s1 + $0x1c4] sm:$0xf0]  ;;  %940 = vmatpush.bf16.msra.mxu0 %v2068_v29  ;;  %v2188_v46 = vor.u32 %v2840_v41, %v2187_v40  ;;  %v2115_v49 = vld [vmem:[%s4284_s1 + $0xb0] sm:$0xf]  ;;  %v2822_v51 = vld [vmem:[%s4284_s1 + $0xb4] sm:$0xf0]  ;;  %v2052_v56 = vor.u32 %v2806_v48, %v2051_v47 }
  0x17   : > { %953 = vmatpush.bf16.msra.mxu1 %v2132_v33  ;;  %v2252_v50 = vor.u32 %v2856_v43, %v2251_v42  ;;  %v2179_v52 = vld [vmem:[%s4284_s1 + $0x130] sm:$0xf]  ;;  %v2838_v53 = vld [vmem:[%s4284_s1 + $0x134] sm:$0xf0]  ;;  %v2116_v57 = vor.u32 %v2822_v51, %v2115_v49  ;;  %v2043_v59 = vld [vmem:[%s4284_s1 + $0x20] sm:$0xf] }
  0x18   : > { %966 = vmatpush.bf16.msra.mxu2 %v2196_v34  ;;  %v2243_v54 = vld [vmem:[%s4284_s1 + $0x1b0] sm:$0xf]  ;;  %v2854_v55 = vld [vmem:[%s4284_s1 + $0x1b4] sm:$0xf0]  ;;  %v2180_v58 = vor.u32 %v2838_v53, %v2179_v52  ;;  %v2804_v60 = vld [vmem:[%s4284_s1 + $0x24] sm:$0xf0] }
  0x19   : > { %979 = vmatpush.bf16.msra.mxu3 %v2260_v38  ;;  %v2107_v61 = vld [vmem:[%s4284_s1 + $0xa0] sm:$0xf]  ;;  %v2244_v62 = vor.u32 %v2854_v55, %v2243_v54  ;;  %v2820_v63 = vld [vmem:[%s4284_s1 + $0xa4] sm:$0xf0]  ;;  %v2044_v4 = vor.u32 %v2804_v60, %v2043_v59  ;;  %v2035_v7 = vld [vmem:[%s4284_s1 + $0x10] sm:$0xf] }
  0x1a   : > { %941 = vmatpush.bf16.msra.mxu0 %v2060_v44  ;;  %v2171_v0 = vld [vmem:[%s4284_s1 + $0x120] sm:$0xf]  ;;  %v2836_v1 = vld [vmem:[%s4284_s1 + $0x124] sm:$0xf0]  ;;  %v2108_v5 = vor.u32 %v2820_v63, %v2107_v61  ;;  %v2802_v8 = vld [vmem:[%s4284_s1 + $0x14] sm:$0xf0] }
  0x1b   : > { %954 = vmatpush.bf16.msra.mxu1 %v2124_v45  ;;  %v2235_v2 = vld [vmem:[%s4284_s1 + $0x1a0] sm:$0xf]  ;;  %v2852_v3 = vld [vmem:[%s4284_s1 + $0x1a4] sm:$0xf0]  ;;  %v2172_v6 = vor.u32 %v2836_v1, %v2171_v0  ;;  %v2099_v9 = vld [vmem:[%s4284_s1 + $0x90] sm:$0xf]  ;;  %v2036_v16 = vor.u32 %v2802_v8, %v2035_v7 }
  0x1c   : > { %967 = vmatpush.bf16.msra.mxu2 %v2188_v46  ;;  %v2236_v10 = vor.u32 %v2852_v3, %v2235_v2  ;;  %v2818_v11 = vld [vmem:[%s4284_s1 + $0x94] sm:$0xf0]  ;;  %v2163_v12 = vld [vmem:[%s4284_s1 + $0x110] sm:$0xf]  ;;  %v2027_v17 = vld [vmem:[%s4284_s1] sm:$0xf] }
  0x1d   : > { %980 = vmatpush.bf16.msra.mxu3 %v2252_v50  ;;  %v2834_v13 = vld [vmem:[%s4284_s1 + $0x114] sm:$0xf0]  ;;  %v2227_v14 = vld [vmem:[%s4284_s1 + $0x190] sm:$0xf]  ;;  %v2800_v18 = vld [vmem:[%s4284_s1 + $0x4] sm:$0xf0]  ;;  %v2100_v19 = vor.u32 %v2818_v11, %v2099_v9 }
  0x1e   : > { %942 = vmatpush.bf16.msra.mxu0 %v2052_v56  ;;  %v2850_v15 = vld [vmem:[%s4284_s1 + $0x194] sm:$0xf0]  ;;  %v2164_v20 = vor.u32 %v2834_v13, %v2163_v12  ;;  %v2091_v21 = vld [vmem:[%s4284_s1 + $0x80] sm:$0xf]  ;;  %v2816_v22 = vld [vmem:[%s4284_s1 + $0x84] sm:$0xf0]  ;;  %v2028_v31 = vor.u32 %v2800_v18, %v2027_v17 }
  0x1f   : > { %955 = vmatpush.bf16.msra.mxu1 %v2116_v57  ;;  %v2155_v23 = vld [vmem:[%s4284_s1 + $0x100] sm:$0xf]  ;;  %v2228_v24 = vor.u32 %v2850_v15, %v2227_v14  ;;  %v2832_v25 = vld [vmem:[%s4284_s1 + $0x104] sm:$0xf0]  ;;  %v2339_v28 = vld [vmem:[%s4284_s1 + $0x270] sm:$0xf]  ;;  %v2092_v35 = vor.u32 %v2816_v22, %v2091_v21 }
  0x20   : > { %968 = vmatpush.bf16.msra.mxu2 %v2180_v58  ;;  %v2219_v26 = vld [vmem:[%s4284_s1 + $0x180] sm:$0xf]  ;;  %v2848_v27 = vld [vmem:[%s4284_s1 + $0x184] sm:$0xf0]  ;;  %v2878_v29 = vld [vmem:[%s4284_s1 + $0x274] sm:$0xf0]  ;;  %v2156_v36 = vor.u32 %v2832_v25, %v2155_v23 }
  0x21   : > { %981 = vmatpush.bf16.msra.mxu3 %v2244_v62  ;;  %v2403_v30 = vld [vmem:[%s4284_s1 + $0x2f0] sm:$0xf]  ;;  %v2894_v32 = vld [vmem:[%s4284_s1 + $0x2f4] sm:$0xf0]  ;;  %v2813_v33 = vld [vmem:[%s4284_s1 + $0x74] sm:$0xf]  ;;  %v2220_v39 = vor.u32 %v2848_v27, %v2219_v26  ;;  %v2340_v40 = vor.u32 %v2878_v29, %v2339_v28 }
  0x22   : > { %943 = vmatpush.bf16.msra.mxu0 %v2044_v4  ;;  %v2085_v34 = vld [vmem:[%s4284_s1 + $0x78] sm:$0xf0]  ;;  %v2829_v37 = vld [vmem:[%s4284_s1 + $0xf4] sm:$0xf]  ;;  %v2404_v41 = vor.u32 %v2894_v32, %v2403_v30  ;;  %v2331_v43 = vld [vmem:[%s4284_s1 + $0x260] sm:$0xf] }
  0x23   : > { %956 = vmatpush.bf16.msra.mxu1 %v2108_v5  ;;  %v2149_v38 = vld [vmem:[%s4284_s1 + $0xf8] sm:$0xf0]  ;;  %v2088_v42 = vor.u32 %v2813_v33, %v2085_v34  ;;  %v2876_v44 = vld [vmem:[%s4284_s1 + $0x264] sm:$0xf0]  ;;  %v2395_v45 = vld [vmem:[%s4284_s1 + $0x2e0] sm:$0xf] }
  0x24   : > { %969 = vmatpush.bf16.msra.mxu2 %v2172_v6  ;;  %v2152_v46 = vor.u32 %v2829_v37, %v2149_v38  ;;  %v2892_v47 = vld [vmem:[%s4284_s1 + $0x2e4] sm:$0xf0]  ;;  %v2811_v48 = vld [vmem:[%s4284_s1 + $0x64] sm:$0xf]  ;;  %v2077_v49 = vld [vmem:[%s4284_s1 + $0x68] sm:$0xf0]  ;;  %v2332_v52 = vor.u32 %v2876_v44, %v2331_v43 }
  0x25   : > { %982 = vmatpush.bf16.msra.mxu3 %v2236_v10  ;;  %v2827_v50 = vld [vmem:[%s4284_s1 + $0xe4] sm:$0xf]  ;;  %v2141_v51 = vld [vmem:[%s4284_s1 + $0xe8] sm:$0xf0]  ;;  %v2323_v53 = vld [vmem:[%s4284_s1 + $0x250] sm:$0xf]  ;;  %v2396_v54 = vor.u32 %v2892_v47, %v2395_v45  ;;  %v2080_v55 = vor.u32 %v2811_v48, %v2077_v49 }
  0x26   : > { %944 = vmatpush.bf16.msra.mxu0 %v2036_v16  ;;  %v2874_v56 = vld [vmem:[%s4284_s1 + $0x254] sm:$0xf0]  ;;  %v2387_v57 = vld [vmem:[%s4284_s1 + $0x2d0] sm:$0xf]  ;;  %s4293_s28 = smov (!%p318_p3, %s2011_s28), 1  ;;  %v2144_v58 = vor.u32 %v2827_v50, %v2141_v51  ;;  %vm1097_vm0 = vcmask 1043456  }
  0x27   : > { %957 = vmatpush.bf16.msra.mxu1 %v2100_v19  ;;  %v2890_v59 = vld [vmem:[%s4284_s1 + $0x2d4] sm:$0xf0]  ;;  %v2809_v60 = vld [vmem:[%s4284_s1 + $0x54] sm:$0xf]  ;;  %v2069_v61 = vld [vmem:[%s4284_s1 + $0x58] sm:$0xf0]  ;;  %v2324_v0 = vor.u32 %v2874_v56, %v2323_v53 }
  0x28   : > { %970 = vmatpush.bf16.msra.mxu2 %v2164_v20  ;;  %v2825_v62 = vld [vmem:[%s4284_s1 + $0xd4] sm:$0xf]  ;;  %v2133_v63 = vld [vmem:[%s4284_s1 + $0xd8] sm:$0xf0]  ;;  %s2991_s23 = smul.u32 12, %s4293_s28  ;;  %v2388_v2 = vor.u32 %v2890_v59, %v2387_v57  ;;  %v2072_v3 = vor.u32 %v2809_v60, %v2069_v61 }
  0x29   : > { %983 = vmatpush.bf16.msra.mxu3 %v2228_v24  ;;  %v2315_v1 = vld [vmem:[%s4284_s1 + $0x240] sm:$0xf]  ;;  %v2872_v4 = vld [vmem:[%s4284_s1 + $0x244] sm:$0xf0]  ;;  %v2136_v7 = vor.u32 %v2825_v62, %v2133_v63  ;;  %v2807_v8 = vld [vmem:[%s4284_s1 + $0x44] sm:$0xf] }
  0x2a   : > { %945 = vmatpush.bf16.msra.mxu0 %v2028_v31  ;;  %v2379_v5 = vld [vmem:[%s4284_s1 + $0x2c0] sm:$0xf]  ;;  %v2888_v6 = vld [vmem:[%s4284_s1 + $0x2c4] sm:$0xf0]  ;;  %s3347_s14 = scalar_lea.vmem %s4283_s0, %s2991_s23  ;;  %v2061_v9 = vld [vmem:[%s4284_s1 + $0x48] sm:$0xf0]  ;;  %v2316_v13 = vor.u32 %v2872_v4, %v2315_v1 }
  0x2b   : > { %958 = vmatpush.bf16.msra.mxu1 %v2092_v35  ;;  %v343_v10 = vld [vmem:[%s3347_s14] sm:$0xff]  ;;  %v2125_v12 = vld [vmem:[%s4284_s1 + $0xc8] sm:$0xf0]  ;;  %v2307_v14 = vld [vmem:[%s4284_s1 + $0x230] sm:$0xf]  ;;  %v2380_v15 = vor.u32 %v2888_v6, %v2379_v5  ;;  %v2064_v16 = vor.u32 %v2807_v8, %v2061_v9 }
  0x2c   : > { %971 = vmatpush.bf16.msra.mxu2 %v2156_v36  ;;  %v2823_v11 = vld [vmem:[%s4284_s1 + $0xc4] sm:$0xf]  ;;  %442 = vst [vmem:[#allocation1] ss:$4 sm:$0xff] %v343_v10  ;;  %v2870_v17 = vld [vmem:[%s4284_s1 + $0x234] sm:$0xf0] }
  0x2d   : > { %984 = vmatpush.bf16.msra.mxu3 %v2220_v39  ;;  %v2371_v18 = vld [vmem:[%s4284_s1 + $0x2b0] sm:$0xf]  ;;  %v2886_v19 = vld [vmem:[%s4284_s1 + $0x2b4] sm:$0xf0]  ;;  %v2128_v20 = vor.u32 %v2823_v11, %v2125_v12  ;;  %v2805_v21 = vld [vmem:[%s4284_s1 + $0x34] sm:$0xf]  ;;  %v2308_v27 = vor.u32 %v2870_v17, %v2307_v14 }
  0x2e   : > { %990 = vmatpush.bf16.msrb.mxu0 %v2340_v40  ;;  %v2053_v22 = vld [vmem:[%s4284_s1 + $0x38] sm:$0xf0]  ;;  %v2821_v23 = vld [vmem:[%s4284_s1 + $0xb4] sm:$0xf]  ;;  %v2299_v25 = vld [vmem:[%s4284_s1 + $0x220] sm:$0xf]  ;;  %v2372_v31 = vor.u32 %v2886_v19, %v2371_v18 }
  0x2f   : > { %1003 = vmatpush.bf16.msrb.mxu1 %v2404_v41  ;;  %v2117_v24 = vld [vmem:[%s4284_s1 + $0xb8] sm:$0xf0]  ;;  %v2868_v26 = vld [vmem:[%s4284_s1 + $0x224] sm:$0xf0]  ;;  %v2363_v28 = vld [vmem:[%s4284_s1 + $0x2a0] sm:$0xf]  ;;  %v2056_v32 = vor.u32 %v2805_v21, %v2053_v22 }
  0x30   : > { %1016 = vmatpush.bf16.msrb.mxu2 %v2088_v42  ;;  %v2884_v29 = vld [vmem:[%s4284_s1 + $0x2a4] sm:$0xf0]  ;;  %v2803_v30 = vld [vmem:[%s4284_s1 + $0x24] sm:$0xf]  ;;  %v2045_v33 = vld [vmem:[%s4284_s1 + $0x28] sm:$0xf0]  ;;  %v2120_v37 = vor.u32 %v2821_v23, %v2117_v24  ;;  %v2300_v41 = vor.u32 %v2868_v26, %v2299_v25 }
  0x31   : > { %1029 = vmatpush.bf16.msrb.mxu3 %v2152_v46  ;;  %v2819_v34 = vld [vmem:[%s4284_s1 + $0xa4] sm:$0xf]  ;;  %v2109_v35 = vld [vmem:[%s4284_s1 + $0xa8] sm:$0xf0]  ;;  %v2291_v40 = vld [vmem:[%s4284_s1 + $0x210] sm:$0xf]  ;;  %v2364_v44 = vor.u32 %v2884_v29, %v2363_v28  ;;  %v2048_v45 = vor.u32 %v2803_v30, %v2045_v33 }
  0x32   : > { %991 = vmatpush.bf16.msrb.mxu0 %v2332_v52  ;;  %v344_v43 = vld [vmem:[%s3347_s14 + $0x8] sm:$0xf]  ;;  %v2866_v46 = vld [vmem:[%s4284_s1 + $0x214] sm:$0xf0]  ;;  %v2355_v47 = vld [vmem:[%s4284_s1 + $0x290] sm:$0xf]  ;;  %v2112_v48 = vor.u32 %v2819_v34, %v2109_v35 }
  0x33   : > { %1004 = vmatpush.bf16.msrb.mxu1 %v2396_v54  ;;  %v3410_v36 = vld.sshfl [vmem:[#allocation1] sm:$0xff pattern:$0x73625140]  ;;  %v3412_v38 = vld.sshfl [vmem:[#allocation1 + $0x8] sm:$0xff pattern:$0x73625140]  ;;  %v2292_v54 = vor.u32 %v2866_v46, %v2291_v40 }
  0x34   : > { %1017 = vmatpush.bf16.msrb.mxu2 %v2080_v55  ;;  %946 = vmatmul.bf16.vlgmr.msra.gmra.mxu0 %v3410_v36  ;;  %v3416_v39 = vld.sshfl [vmem:[#allocation1 + $0x10] sm:$0xff pattern:$0x73625140]  ;;  %v3422_v42 = vld.sshfl [vmem:[#allocation1 + $0x18] sm:$0xff pattern:$0x73625140] }
  0x35   : > { %1030 = vmatpush.bf16.msrb.mxu3 %v2144_v58  ;;  %959 = vmatmul.bf16.vlgmr.msra.gmra.mxu1 %v3412_v38  ;;  %445 = vst [vmem:[#allocation1 + $0x20] ss:$4 sm:$0xff] %v344_v43  ;;  %v2882_v49 = vld [vmem:[%s4284_s1 + $0x294] sm:$0xf0]  ;;  %v2801_v50 = vld [vmem:[%s4284_s1 + $0x14] sm:$0xf] }
  0x36   : > { %992 = vmatpush.bf16.msrb.mxu0 %v2324_v0  ;;  %972 = vmatmul.bf16.vlgmr.msra.gmra.mxu2 %v3416_v39  ;;  %v2037_v51 = vld [vmem:[%s4284_s1 + $0x18] sm:$0xf0]  ;;  %v2817_v52 = vld [vmem:[%s4284_s1 + $0x94] sm:$0xf]  ;;  %v2283_v55 = vld [vmem:[%s4284_s1 + $0x200] sm:$0xf]  ;;  %v2356_v57 = vor.u32 %v2882_v49, %v2355_v47 }
  0x37   : > { %1005 = vmatpush.bf16.msrb.mxu1 %v2388_v2  ;;  %985 = vmatmul.bf16.vlgmr.msra.gmra.mxu3 %v3422_v42  ;;  %v2101_v53 = vld [vmem:[%s4284_s1 + $0x98] sm:$0xf0]  ;;  %v2864_v56 = vld [vmem:[%s4284_s1 + $0x204] sm:$0xf0]  ;;  %v2040_v58 = vor.u32 %v2801_v50, %v2037_v51  ;;  %v2347_v59 = vld [vmem:[%s4284_s1 + $0x280] sm:$0xf] }
  0x38   : > { %1018 = vmatpush.bf16.msrb.mxu2 %v2072_v3  ;;  %v2880_v60 = vld [vmem:[%s4284_s1 + $0x284] sm:$0xf0]  ;;  %v2799_v61 = vld [vmem:[%s4284_s1 + $0x4] sm:$0xf]  ;;  %v2104_v62 = vor.u32 %v2817_v52, %v2101_v53  ;;  %v2029_v63 = vld [vmem:[%s4284_s1 + $0x8] sm:$0xf0]  ;;  %v2284_v5 = vor.u32 %v2864_v56, %v2283_v55 }
  0x39   : > { %1031 = vmatpush.bf16.msrb.mxu3 %v2136_v7  ;;  %v2815_v0 = vld [vmem:[%s4284_s1 + $0x84] sm:$0xf]  ;;  %v2093_v1 = vld [vmem:[%s4284_s1 + $0x88] sm:$0xf0]  ;;  %v2845_v2 = vld [vmem:[%s4284_s1 + $0x174] sm:$0xf]  ;;  %v2348_v9 = vor.u32 %v2880_v60, %v2347_v59  ;;  %v2032_v10 = vor.u32 %v2799_v61, %v2029_v63 }
  0x3a   : > { %993 = vmatpush.bf16.msrb.mxu0 %v2316_v13  ;;  %v2213_v3 = vld [vmem:[%s4284_s1 + $0x178] sm:$0xf0]  ;;  %v2861_v4 = vld [vmem:[%s4284_s1 + $0x1f4] sm:$0xf]  ;;  %v2096_v13 = vor.u32 %v2815_v0, %v2093_v1  ;;  %v2205_v18 = vld [vmem:[%s4284_s1 + $0x168] sm:$0xf0] }
  0x3b   : > { %1006 = vmatpush.bf16.msrb.mxu1 %v2380_v15  ;;  %v2277_v6 = vld [vmem:[%s4284_s1 + $0x1f8] sm:$0xf0]  ;;  %v2877_v7 = vld [vmem:[%s4284_s1 + $0x274] sm:$0xf]  ;;  %v2216_v14 = vor.u32 %v2845_v2, %v2213_v3  ;;  %v2843_v15 = vld [vmem:[%s4284_s1 + $0x164] sm:$0xf] }
  0x3c   : > { %1019 = vmatpush.bf16.msrb.mxu2 %v2064_v16  ;;  %v2341_v8 = vld [vmem:[%s4284_s1 + $0x278] sm:$0xf0]  ;;  %v2893_v11 = vld [vmem:[%s4284_s1 + $0x2f4] sm:$0xf]  ;;  %v2280_v16 = vor.u32 %v2861_v4, %v2277_v6  ;;  %v2859_v19 = vld [vmem:[%s4284_s1 + $0x1e4] sm:$0xf]  ;;  %v2208_v28 = vor.u32 %v2843_v15, %v2205_v18 }
  0x3d   : > { %1032 = vmatpush.bf16.msrb.mxu3 %v2128_v20  ;;  %v2405_v12 = vld [vmem:[%s4284_s1 + $0x2f8] sm:$0xf0]  ;;  %v2344_v17 = vor.u32 %v2877_v7, %v2341_v8  ;;  %v2269_v20 = vld [vmem:[%s4284_s1 + $0x1e8] sm:$0xf0]  ;;  %v2875_v22 = vld [vmem:[%s4284_s1 + $0x264] sm:$0xf] }
  0x3e   : > { %994 = vmatpush.bf16.msrb.mxu0 %v2308_v27  ;;  %v2408_v21 = vor.u32 %v2893_v11, %v2405_v12  ;;  %v2333_v23 = vld [vmem:[%s4284_s1 + $0x268] sm:$0xf0]  ;;  %v2891_v24 = vld [vmem:[%s4284_s1 + $0x2e4] sm:$0xf]  ;;  %v2272_v29 = vor.u32 %v2859_v19, %v2269_v20  ;;  %v2857_v33 = vld [vmem:[%s4284_s1 + $0x1d4] sm:$0xf] }
  0x3f   : > { %1007 = vmatpush.bf16.msrb.mxu1 %v2372_v31  ;;  %v3516_v25 = vld.sshfl [vmem:[#allocation1 + $0x20] sm:$0xff pattern:$0x73625140]  ;;  %v2397_v26 = vld [vmem:[%s4284_s1 + $0x2e8] sm:$0xf0]  ;;  %v2336_v30 = vor.u32 %v2875_v22, %v2333_v23  ;;  %s3868_s14 = sshll.u32 %s4293_s28, 3 }
  0x40   : > { %1020 = vmatpush.bf16.msrb.mxu2 %v2056_v32  ;;  %v3521_v27 = vld.sshfl [vmem:[#allocation1 + $0x28] sm:$0xff pattern:$0x73625140]  ;;  %v2841_v31 = vld [vmem:[%s4284_s1 + $0x154] sm:$0xf]  ;;  %v2400_v34 = vor.u32 %v2891_v24, %v2397_v26  ;;  %s327_s29 = scalar_lea.vmem %s4288_s5, %s3868_s14  ;;  %s332_s9 = scalar_lea.vmem %s4289_s6, %s3868_s14 }
  0x41   : > { %1033 = vmatpush.bf16.msrb.mxu3 %v2120_v37  ;;  %v2197_v32 = vld [vmem:[%s4284_s1 + $0x158] sm:$0xf0]  ;;  %v2873_v37 = vld [vmem:[%s4284_s1 + $0x254] sm:$0xf]  ;;  %v2839_v47 = vld [vmem:[%s4284_s1 + $0x144] sm:$0xf]  ;;  %s337_s28 = scalar_lea.vmem %s4290_s7, %s3868_s14  ;;  %s342_s11 = scalar_lea.vmem %s4291_s8, %s3868_s14 }
  0x42   : > { %995 = vmatpush.bf16.msrb.mxu0 %v2300_v41  ;;  %v2261_v35 = vld [vmem:[%s4284_s1 + $0x1d8] sm:$0xf0]  ;;  %v2889_v41 = vld [vmem:[%s4284_s1 + $0x2d4] sm:$0xf]  ;;  %v2253_v50 = vld [vmem:[%s4284_s1 + $0x1c8] sm:$0xf0] }
  0x43   : > { %1008 = vmatpush.bf16.msrb.mxu1 %v2364_v44  ;;  %v2325_v40 = vld [vmem:[%s4284_s1 + $0x258] sm:$0xf0]  ;;  %v2200_v44 = vor.u32 %v2841_v31, %v2197_v32  ;;  %v2871_v51 = vld [vmem:[%s4284_s1 + $0x244] sm:$0xf]  ;;  %v2317_v52 = vld [vmem:[%s4284_s1 + $0x248] sm:$0xf0] }
  0x44   : > { %1021 = vmatpush.bf16.msrb.mxu2 %v2048_v45  ;;  %v2389_v43 = vld [vmem:[%s4284_s1 + $0x2d8] sm:$0xf0]  ;;  %v2264_v45 = vor.u32 %v2857_v33, %v2261_v35  ;;  %v2328_v46 = vor.u32 %v2873_v37, %v2325_v40  ;;  %v2887_v53 = vld [vmem:[%s4284_s1 + $0x2c4] sm:$0xf]  ;;  %v2853_v59 = vld [vmem:[%s4284_s1 + $0x1b4] sm:$0xf] }
  0x45   : > { %1034 = vmatpush.bf16.msrb.mxu3 %v2112_v48  ;;  %v2855_v48 = vld [vmem:[%s4284_s1 + $0x1c4] sm:$0xf]  ;;  %v2392_v49 = vor.u32 %v2889_v41, %v2389_v43  ;;  %v2245_v61 = vld [vmem:[%s4284_s1 + $0x1b8] sm:$0xf0]  ;;  %v2885_v0 = vld [vmem:[%s4284_s1 + $0x2b4] sm:$0xf] }
  0x46   : > { %996 = vmatpush.bf16.msrb.mxu0 %v2292_v54  ;;  %v2381_v54 = vld [vmem:[%s4284_s1 + $0x2c8] sm:$0xf0]  ;;  %v2256_v56 = vor.u32 %v2855_v48, %v2253_v50  ;;  %v2309_v63 = vld [vmem:[%s4284_s1 + $0x238] sm:$0xf0]  ;;  %v2248_v3 = vor.u32 %v2853_v59, %v2245_v61  ;;  %v2851_v7 = vld [vmem:[%s4284_s1 + $0x1a4] sm:$0xf] }
  0x47   : > { %1009 = vmatpush.bf16.msrb.mxu1 %v2356_v57  ;;  %v2320_v57 = vor.u32 %v2871_v51, %v2317_v52  ;;  %v2384_v60 = vor.u32 %v2887_v53, %v2381_v54  ;;  %v2373_v1 = vld [vmem:[%s4284_s1 + $0x2b8] sm:$0xf0]  ;;  %v2173_v6 = vld [vmem:[%s4284_s1 + $0x128] sm:$0xf0]  ;;  %v2883_v12 = vld [vmem:[%s4284_s1 + $0x2a4] sm:$0xf] }
  0x48   : > { %1022 = vmatpush.bf16.msrb.mxu2 %v2040_v58  ;;  %v2837_v58 = vld [vmem:[%s4284_s1 + $0x134] sm:$0xf]  ;;  %v2376_v8 = vor.u32 %v2885_v0, %v2373_v1  ;;  %v2301_v11 = vld [vmem:[%s4284_s1 + $0x228] sm:$0xf0]  ;;  %v2165_v18 = vld [vmem:[%s4284_s1 + $0x118] sm:$0xf0] }
  0x49   : > { %1035 = vmatpush.bf16.msrb.mxu3 %v2104_v62  ;;  %v2869_v62 = vld [vmem:[%s4284_s1 + $0x234] sm:$0xf]  ;;  %v2293_v23 = vld [vmem:[%s4284_s1 + $0x218] sm:$0xf0]  ;;  %v2157_v32 = vld [vmem:[%s4284_s1 + $0x108] sm:$0xf0] }
  0x4a   : > { %997 = vmatpush.bf16.msrb.mxu0 %v2284_v5  ;;  %v2312_v4 = vor.u32 %v2869_v62, %v2309_v63  ;;  %v2835_v5 = vld [vmem:[%s4284_s1 + $0x124] sm:$0xf]  ;;  %v2849_v19 = vld [vmem:[%s4284_s1 + $0x194] sm:$0xf]  ;;  %v2357_v26 = vld [vmem:[%s4284_s1 + $0x298] sm:$0xf0] }
  0x4b   : > { %1010 = vmatpush.bf16.msrb.mxu1 %v2348_v9  ;;  %v2237_v9 = vld [vmem:[%s4284_s1 + $0x1a8] sm:$0xf0]  ;;  %v2865_v22 = vld [vmem:[%s4284_s1 + $0x214] sm:$0xf]  ;;  %v2847_v33 = vld [vmem:[%s4284_s1 + $0x184] sm:$0xf] }
  0x4c   : > { %1023 = vmatpush.bf16.msrb.mxu2 %v2032_v10  ;;  %v2867_v10 = vld [vmem:[%s4284_s1 + $0x224] sm:$0xf]  ;;  %v2240_v15 = vor.u32 %v2851_v7, %v2237_v9  ;;  %v2881_v24 = vld [vmem:[%s4284_s1 + $0x294] sm:$0xf]  ;;  %v2296_v31 = vor.u32 %v2865_v22, %v2293_v23  ;;  %v2285_v40 = vld [vmem:[%s4284_s1 + $0x208] sm:$0xf0] }
  0x4d   : > { %1036 = vmatpush.bf16.msrb.mxu3 %v2096_v13  ;;  %998 = vmatmul.bf16.vlgmr.msrb.gmra.mxu0 %v3516_v25  ;;  %v2365_v13 = vld [vmem:[%s4284_s1 + $0x2a8] sm:$0xf0]  ;;  %v2360_v35 = vor.u32 %v2881_v24, %v2357_v26  ;;  %v2863_v37 = vld [vmem:[%s4284_s1 + $0x204] sm:$0xf]  ;;  %v2459_v53 = vld [vmem:[%s4285_s2 + $0x60] sm:$0xf] }
  0x4e   : > { %1042 = vmatpush.bf16.msra.mxu0 %v2216_v14  ;;  %1011 = vmatmul.bf16.vlgmr.msrb.gmra.mxu1 %v3521_v27  ;;  %v2176_v14 = vor.u32 %v2835_v5, %v2173_v6  ;;  %v2368_v20 = vor.u32 %v2883_v12, %v2365_v13  ;;  %v2879_v41 = vld [vmem:[%s4284_s1 + $0x284] sm:$0xf]  ;;  %v2349_v43 = vld [vmem:[%s4284_s1 + $0x288] sm:$0xf0]  ;;  %v2908_v54 = vld [vmem:[%s4285_s2 + $0x64] sm:$0xf0] }
  0x4f   : > { %1055 = vmatpush.bf16.msra.mxu1 %v2280_v16  ;;  %1024 = vmatmul.bf16.vlgmr.msrb.gmra.mxu2 %v3410_v36  ;;  %v2189_v36 = vld [vmem:[%s4284_s1 + $0x148] sm:$0xf0]  ;;  %v2304_v16 = vor.u32 %v2867_v10, %v2301_v11  ;;  %v2352_v50 = vor.u32 %v2879_v41, %v2349_v43  ;;  %v2906_v59 = vld [vmem:[%s4285_s2 + $0x54] sm:$0xf0]  ;;  %v2903_v62 = vld [vmem:[%s4285_s2 + $0x44] sm:$0xf] }
  0x50   : > { %1068 = vmatpush.bf16.msra.mxu2 %v2344_v17  ;;  %1037 = vmatmul.bf16.vlgmr.msrb.gmra.mxu3 %v3412_v38  ;;  %v2192_v55 = vor.u32 %v2839_v47, %v2189_v36  ;;  %v2181_v38 = vld [vmem:[%s4284_s1 + $0x138] sm:$0xf0]  ;;  %v2833_v17 = vld [vmem:[%s4284_s1 + $0x114] sm:$0xf]  ;;  %v2445_v63 = vld [vmem:[%s4285_s2 + $0x48] sm:$0xf0] }
  0x51   : > { %1081 = vmatpush.bf16.msra.mxu3 %v2408_v21  ;;  %v2184_v2 = vor.u32 %v2837_v58, %v2181_v38  ;;  %v2229_v21 = vld [vmem:[%s4284_s1 + $0x198] sm:$0xf0]  ;;  %v2909_v47 = vld [vmem:[%s4285_s2 + $0x74] sm:$0xf]  ;;  %v2451_v38 = vld [vmem:[%s4285_s2 + $0x50] sm:$0xf]  ;;  %v2448_v1 = vor.u32 %v2903_v62, %v2445_v63 }
  0x52   : > { %1043 = vmatpush.bf16.msra.mxu0 %v2208_v28  ;;  %v2168_v28 = vor.u32 %v2833_v17, %v2165_v18  ;;  %v2469_v36 = vld [vmem:[%s4285_s2 + $0x78] sm:$0xf0]  ;;  %v2427_v7 = vld [vmem:[%s4285_s2 + $0x20] sm:$0xf]  ;;  %v2899_v10 = vld [vmem:[%s4285_s2 + $0x24] sm:$0xf] }
  0x53   : > { %1056 = vmatpush.bf16.msra.mxu1 %v2272_v29  ;;  %v2831_v29 = vld [vmem:[%s4284_s1 + $0x104] sm:$0xf]  ;;  %v2472_v52 = vor.u32 %v2909_v47, %v2469_v36  ;;  %v2437_v6 = vld [vmem:[%s4285_s2 + $0x38] sm:$0xf0]  ;;  %v2429_v11 = vld [vmem:[%s4285_s2 + $0x28] sm:$0xf0] }
  0x54   : > { %1069 = vmatpush.bf16.msra.mxu2 %v2336_v30  ;;  %v2232_v30 = vor.u32 %v2849_v19, %v2229_v21  ;;  %v2432_v13 = vor.u32 %v2899_v10, %v2429_v11  ;;  %v2421_v18 = vld [vmem:[%s4285_s2 + $0x18] sm:$0xf0]  ;;  %v2896_v21 = vld [vmem:[%s4285_s2 + $0x4] sm:$0xf0]  ;;  %v2895_v22 = vld [vmem:[%s4285_s2 + $0x4] sm:$0xf] }
  0x55   : > { %1082 = vmatpush.bf16.msra.mxu3 %v2400_v34  ;;  %v2221_v34 = vld [vmem:[%s4284_s1 + $0x188] sm:$0xf0]  ;;  %v2922_v47 = vld [vmem:[%s4285_s2 + $0xd4] sm:$0xf0]  ;;  %v2921_v36 = vld [vmem:[%s4285_s2 + $0xd4] sm:$0xf] }
  0x56   : > { %1044 = vmatpush.bf16.msra.mxu0 %v2200_v44  ;;  %v2467_v44 = vld [vmem:[%s4285_s2 + $0x70] sm:$0xf]  ;;  %v2224_v48 = vor.u32 %v2847_v33, %v2221_v34  ;;  %v2413_v24 = vld [vmem:[%s4285_s2 + $0x8] sm:$0xf0]  ;;  %v2523_v34 = vld [vmem:[%s4285_s2 + $0xe0] sm:$0xf] }
  0x57   : > { %1057 = vmatpush.bf16.msra.mxu1 %v2264_v45  ;;  %v2910_v45 = vld [vmem:[%s4285_s2 + $0x74] sm:$0xf0]  ;;  %v2416_v26 = vor.u32 %v2895_v22, %v2413_v24  ;;  %v2525_v41 = vld [vmem:[%s4285_s2 + $0xe8] sm:$0xf0]  ;;  %v2911_v22 = vld [vmem:[%s4285_s2 + $0x84] sm:$0xf] }
  0x58   : > { %1070 = vmatpush.bf16.msra.mxu2 %v2328_v46  ;;  %v2160_v46 = vor.u32 %v2831_v29, %v2157_v32  ;;  %v2468_v51 = vor.u32 %v2910_v45, %v2467_v44  ;;  %v2926_v29 = vld [vmem:[%s4285_s2 + $0xf4] sm:$0xf0]  ;;  %v2533_v32 = vld [vmem:[%s4285_s2 + $0xf8] sm:$0xf0] }
  0x59   : > { %1083 = vmatpush.bf16.msra.mxu3 %v2392_v49  ;;  %v2288_v49 = vor.u32 %v2863_v37, %v2285_v40  ;;  %v2923_v37 = vld [vmem:[%s4285_s2 + $0xe4] sm:$0xf] }
  0x5a   : > { %1045 = vmatpush.bf16.msra.mxu0 %v2192_v55  ;;  %v2907_v55 = vld [vmem:[%s4285_s2 + $0x64] sm:$0xf]  ;;  %v2528_v43 = vor.u32 %v2923_v37, %v2525_v41 }
  0x5b   : > { %1058 = vmatpush.bf16.msra.mxu1 %v2256_v56  ;;  %v2461_v56 = vld [vmem:[%s4285_s2 + $0x68] sm:$0xf0] }
  0x5c   : > { %1071 = vmatpush.bf16.msra.mxu2 %v2320_v57  ;;  %v2460_v57 = vor.u32 %v2908_v54, %v2459_v53  ;;  %v2464_v58 = vor.u32 %v2907_v55, %v2461_v56  ;;  %v2919_v53 = vld [vmem:[%s4285_s2 + $0xc4] sm:$0xf]  ;;  %v2509_v55 = vld [vmem:[%s4285_s2 + $0xc8] sm:$0xf0]  ;;  %v2499_v56 = vld [vmem:[%s4285_s2 + $0xb0] sm:$0xf] }
  0x5d   : > { %1084 = vmatpush.bf16.msra.mxu3 %v2384_v60  ;;  %v2452_v60 = vor.u32 %v2906_v59, %v2451_v38  ;;  %v2512_v38 = vor.u32 %v2919_v53, %v2509_v55  ;;  %v2917_v59 = vld [vmem:[%s4285_s2 + $0xb4] sm:$0xf]  ;;  %v2595_v53 = vld [vmem:[%s4286_s3 + $0x70] sm:$0xf] }
  0x5e   : > { %1046 = vmatpush.bf16.msra.mxu0 %v2184_v2  ;;  %v2435_v2 = vld [vmem:[%s4285_s2 + $0x30] sm:$0xf]  ;;  %v2941_v55 = vld [vmem:[%s4286_s3 + $0x74] sm:$0xf] }
  0x5f   : > { %1059 = vmatpush.bf16.msra.mxu1 %v2248_v3  ;;  %v2902_v3 = vld [vmem:[%s4285_s2 + $0x34] sm:$0xf0] }
  0x60   : > { %1072 = vmatpush.bf16.msra.mxu2 %v2312_v4  ;;  %v2901_v4 = vld [vmem:[%s4285_s2 + $0x34] sm:$0xf]  ;;  %v2436_v5 = vor.u32 %v2902_v3, %v2435_v2  ;;  %v2491_v2 = vld [vmem:[%s4285_s2 + $0xa0] sm:$0xf]  ;;  %v2916_v3 = vld [vmem:[%s4285_s2 + $0xa4] sm:$0xf0] }
  0x61   : > { %1085 = vmatpush.bf16.msra.mxu3 %v2376_v8  ;;  %v2900_v8 = vld [vmem:[%s4285_s2 + $0x24] sm:$0xf0]  ;;  %v2440_v9 = vor.u32 %v2901_v4, %v2437_v6  ;;  %v2915_v4 = vld [vmem:[%s4285_s2 + $0xa4] sm:$0xf]  ;;  %v2493_v6 = vld [vmem:[%s4285_s2 + $0xa8] sm:$0xf0] }
  0x62   : > { %1047 = vmatpush.bf16.msra.mxu0 %v2176_v14  ;;  %v2428_v12 = vor.u32 %v2900_v8, %v2427_v7  ;;  %v2419_v14 = vld [vmem:[%s4285_s2 + $0x10] sm:$0xf]  ;;  %v2496_v8 = vor.u32 %v2915_v4, %v2493_v6  ;;  %v2581_v6 = vld [vmem:[%s4286_s3 + $0x58] sm:$0xf0] }
  0x63   : > { %1060 = vmatpush.bf16.msra.mxu1 %v2240_v15  ;;  %v2898_v15 = vld [vmem:[%s4285_s2 + $0x14] sm:$0xf0] }
  0x64   : > { %1073 = vmatpush.bf16.msra.mxu2 %v2304_v16  ;;  %v2897_v16 = vld [vmem:[%s4285_s2 + $0x14] sm:$0xf]  ;;  %v2420_v17 = vor.u32 %v2898_v15, %v2419_v14 }
  0x65   : > { %1086 = vmatpush.bf16.msra.mxu3 %v2368_v20  ;;  %v2424_v19 = vor.u32 %v2897_v16, %v2421_v18  ;;  %v2411_v20 = vld [vmem:[%s4285_s2] sm:$0xf]  ;;  %v2913_v14 = vld [vmem:[%s4285_s2 + $0x94] sm:$0xf] }
  0x66   : > { %1048 = vmatpush.bf16.msra.mxu0 %v2168_v28  ;;  %v2412_v23 = vor.u32 %v2896_v21, %v2411_v20  ;;  %v2531_v28 = vld [vmem:[%s4285_s2 + $0xf0] sm:$0xf]  ;;  %v2475_v20 = vld [vmem:[%s4285_s2 + $0x80] sm:$0xf]  ;;  %v2912_v21 = vld [vmem:[%s4285_s2 + $0x84] sm:$0xf0] }
  0x67   : > { %1061 = vmatpush.bf16.msra.mxu1 %v2232_v30  ;;  %v2925_v30 = vld [vmem:[%s4285_s2 + $0xf4] sm:$0xf]  ;;  %v2476_v24 = vor.u32 %v2912_v21, %v2475_v20  ;;  %v2954_v20 = vld [vmem:[%s4286_s3 + $0xd4] sm:$0xf0] }
  0x68   : > { %1074 = vmatpush.bf16.msra.mxu2 %v2296_v31  ;;  %v2532_v31 = vor.u32 %v2926_v29, %v2531_v28  ;;  %v2536_v33 = vor.u32 %v2925_v30, %v2533_v32 }
  0x69   : > { %1087 = vmatpush.bf16.msra.mxu3 %v2360_v35  ;;  %v2924_v35 = vld [vmem:[%s4285_s2 + $0xe4] sm:$0xf0] }
  0x6a   : > { %1049 = vmatpush.bf16.msra.mxu0 %v2160_v46  ;;  %v2524_v40 = vor.u32 %v2924_v35, %v2523_v34  ;;  %v2515_v46 = vld [vmem:[%s4285_s2 + $0xd0] sm:$0xf] }
  0x6b   : > { %1062 = vmatpush.bf16.msra.mxu1 %v2224_v48  ;;  %v2516_v48 = vor.u32 %v2922_v47, %v2515_v46 }
  0x6c   : > { %1075 = vmatpush.bf16.msra.mxu2 %v2288_v49  ;;  %v2517_v49 = vld [vmem:[%s4285_s2 + $0xd8] sm:$0xf0] }
  0x6d   : > { %1088 = vmatpush.bf16.msra.mxu3 %v2352_v50  ;;  %1050 = vmatmul.bf16.vlgmr.msra.gmra.mxu0 %v3416_v39  ;;  %v2905_v39 = vld [vmem:[%s4285_s2 + $0x54] sm:$0xf]  ;;  %v2520_v50 = vor.u32 %v2921_v36, %v2517_v49 }
  0x6e   : > { %1295 = vmatpush.bf16.msrb.mxu0 %v2468_v51  ;;  %1063 = vmatmul.bf16.vlgmr.msra.gmra.mxu1 %v3422_v42  ;;  %v2453_v42 = vld [vmem:[%s4285_s2 + $0x58] sm:$0xf0]  ;;  %v2507_v51 = vld [vmem:[%s4285_s2 + $0xc0] sm:$0xf] }
  0x6f   : > { %1076 = vmatmul.bf16.vlgmr.msra.gmra.mxu2 %v3516_v25  ;;  %v2443_v25 = vld [vmem:[%s4285_s2 + $0x40] sm:$0xf]  ;;  %v2456_v61 = vor.u32 %v2905_v39, %v2453_v42  ;;  %1308 = vmatpush.bf16.msrb.mxu1 %v2532_v31  ;;  %v2501_v39 = vld [vmem:[%s4285_s2 + $0xb8] sm:$0xf0] }
  0x70   : > { %1321 = vmatpush.bf16.msrb.mxu2 %v2472_v52  ;;  %1089 = vmatmul.bf16.vlgmr.msra.gmra.mxu3 %v3521_v27  ;;  %v2904_v27 = vld [vmem:[%s4285_s2 + $0x44] sm:$0xf0] }
  0x71   : > { %v2444_v0 = vor.u32 %v2904_v27, %v2443_v25  ;;  %1334 = vmatpush.bf16.msrb.mxu3 %v2536_v33  ;;  %v2920_v52 = vld [vmem:[%s4285_s2 + $0xc4] sm:$0xf0] }
  0x72   : > { %1296 = vmatpush.bf16.msrb.mxu0 %v2460_v57  ;;  %v2508_v54 = vor.u32 %v2920_v52, %v2507_v51  ;;  %v2918_v57 = vld [vmem:[%s4285_s2 + $0xb4] sm:$0xf0] }
  0x73   : > { %1309 = vmatpush.bf16.msrb.mxu1 %v2524_v40  ;;  %v2500_v27 = vor.u32 %v2918_v57, %v2499_v56  ;;  %v2597_v57 = vld [vmem:[%s4286_s3 + $0x78] sm:$0xf0] }
  0x74   : > { %1322 = vmatpush.bf16.msrb.mxu2 %v2464_v58 }
  0x75   : > { %1335 = vmatpush.bf16.msrb.mxu3 %v2528_v43 }
  0x76   : > { %1297 = vmatpush.bf16.msrb.mxu0 %v2452_v60 }
  0x77   : > { %1310 = vmatpush.bf16.msrb.mxu1 %v2516_v48 }
  0x78   : > { %1323 = vmatpush.bf16.msrb.mxu2 %v2456_v61  ;;  %v2504_v61 = vor.u32 %v2917_v59, %v2501_v39  ;;  %v2600_v59 = vor.u32 %v2941_v55, %v2597_v57  ;;  %v2939_v39 = vld [vmem:[%s4286_s3 + $0x64] sm:$0xf]  ;;  %v2549_v57 = vld [vmem:[%s4286_s3 + $0x18] sm:$0xf0] }
  0x79   : > { %1336 = vmatpush.bf16.msrb.mxu3 %v2520_v50 }
  0x7a   : > { %1298 = vmatpush.bf16.msrb.mxu0 %v2444_v0 }
  0x7b   : > { %1311 = vmatpush.bf16.msrb.mxu1 %v2508_v54  ;;  %v2942_v54 = vld [vmem:[%s4286_s3 + $0x74] sm:$0xf0] }
  0x7c   : > { %1324 = vmatpush.bf16.msrb.mxu2 %v2448_v1  ;;  %v2596_v56 = vor.u32 %v2942_v54, %v2595_v53  ;;  %v2547_v53 = vld [vmem:[%s4286_s3 + $0x10] sm:$0xf]  ;;  %v2930_v54 = vld [vmem:[%s4286_s3 + $0x14] sm:$0xf0] }
  0x7d   : > { %1337 = vmatpush.bf16.msrb.mxu3 %v2512_v38  ;;  %v2940_v38 = vld [vmem:[%s4286_s3 + $0x64] sm:$0xf0] }
  0x7e   : > { %1299 = vmatpush.bf16.msrb.mxu0 %v2436_v5  ;;  %v2492_v5 = vor.u32 %v2916_v3, %v2491_v2  ;;  %v2938_v2 = vld [vmem:[%s4286_s3 + $0x54] sm:$0xf0] }
  0x7f   : > { %1312 = vmatpush.bf16.msrb.mxu1 %v2500_v27  ;;  %v2659_v27 = vld [vmem:[%s4286_s3 + $0xf0] sm:$0xf] }
  0x80   : > { %1325 = vmatpush.bf16.msrb.mxu2 %v2440_v9 }
  0x81   : > { %1338 = vmatpush.bf16.msrb.mxu3 %v2504_v61  ;;  %v2958_v61 = vld [vmem:[%s4286_s3 + $0xf4] sm:$0xf0] }
  0x82   : > { %1300 = vmatpush.bf16.msrb.mxu0 %v2428_v12  ;;  %v2483_v12 = vld [vmem:[%s4285_s2 + $0x90] sm:$0xf] }
  0x83   : > { %1313 = vmatpush.bf16.msrb.mxu1 %v2492_v5  ;;  %v2937_v5 = vld [vmem:[%s4286_s3 + $0x54] sm:$0xf] }
  0x84   : > { %1326 = vmatpush.bf16.msrb.mxu2 %v2432_v13  ;;  %v2914_v13 = vld [vmem:[%s4285_s2 + $0x94] sm:$0xf0] }
  0x85   : > { %1339 = vmatpush.bf16.msrb.mxu3 %v2496_v8  ;;  %v2484_v16 = vor.u32 %v2914_v13, %v2483_v12  ;;  %v2584_v8 = vor.u32 %v2937_v5, %v2581_v6  ;;  %v2611_v6 = vld [vmem:[%s4286_s3 + $0x90] sm:$0xf] }
  0x86   : > { %1301 = vmatpush.bf16.msrb.mxu0 %v2420_v17  ;;  %v2485_v17 = vld [vmem:[%s4285_s2 + $0x98] sm:$0xf0] }
  0x87   : > { %v2488_v18 = vor.u32 %v2913_v14, %v2485_v17  ;;  %1314 = vmatpush.bf16.msrb.mxu1 %v2484_v16  ;;  %v2571_v14 = vld [vmem:[%s4286_s3 + $0x40] sm:$0xf]  ;;  %v2935_v16 = vld [vmem:[%s4286_s3 + $0x44] sm:$0xf] }
  0x88   : > { %1327 = vmatpush.bf16.msrb.mxu2 %v2424_v19 }
  0x89   : > { %1340 = vmatpush.bf16.msrb.mxu3 %v2488_v18  ;;  %v2573_v18 = vld [vmem:[%s4286_s3 + $0x48] sm:$0xf0] }
  0x8a   : > { %1302 = vmatpush.bf16.msrb.mxu0 %v2412_v23  ;;  %v2576_v21 = vor.u32 %v2935_v16, %v2573_v18 }
  0x8b   : > { %1315 = vmatpush.bf16.msrb.mxu1 %v2476_v24  ;;  %v2563_v24 = vld [vmem:[%s4286_s3 + $0x30] sm:$0xf] }
  0x8c   : > { %1328 = vmatpush.bf16.msrb.mxu2 %v2416_v26  ;;  %v2477_v26 = vld [vmem:[%s4285_s2 + $0x88] sm:$0xf0] }
  0x8d   : > { %v2480_v29 = vor.u32 %v2911_v22, %v2477_v26  ;;  %v2953_v22 = vld [vmem:[%s4286_s3 + $0xd4] sm:$0xf] }
  0x8e   : > { %1547 = vmatpush.bf16.msra.mxu0 %v2596_v56  ;;  %v2929_v56 = vld [vmem:[%s4286_s3 + $0x14] sm:$0xf] }
  0x8f   : > { %1341 = vmatpush.bf16.msrb.mxu3 %v2480_v29  ;;  %v2933_v29 = vld [vmem:[%s4286_s3 + $0x34] sm:$0xf] }
  0x90   : > { %1573 = vmatpush.bf16.msra.mxu2 %v2600_v59 }
  0xb1   : > { %v947_v44 = vpop.f32.mrf.mxu0 }
  0xb2   : > { %v960_v45 = vpop.f32.mrf.mxu1 }
  0xb3   : > { %v961_v58 = vadd.f32 %v960_v45, %v947_v44 }
  0xb9   : > { %v973_v60 = vpop.f32.mrf.mxu2  ;;  %v949_v42 = vpop.f32.mrf.mxu0 }
  0xba   : > { %v962_v25 = vpop.f32.mrf.mxu1  ;;  %v974_v62 = vadd.f32 %v973_v60, %v961_v58  ;;  %v986_v63 = vpop.f32.mrf.mxu3  ;;  %v2587_v58 = vld [vmem:[%s4286_s3 + $0x60] sm:$0xf]  ;;  %v2589_v60 = vld [vmem:[%s4286_s3 + $0x68] sm:$0xf0] }
  0xbb   : > { %v2588_v42 = vor.u32 %v2940_v38, %v2587_v58  ;;  %v2592_v25 = vor.u32 %v2939_v39, %v2589_v60  ;;  %v2548_v38 = vor.u32 %v2930_v54, %v2547_v53  ;;  %v2552_v39 = vor.u32 %v2929_v56, %v2549_v57  ;;  %v2619_v60 = vld [vmem:[%s4286_s3 + $0xa0] sm:$0xf]  ;;  %v2771_v57 = vld [vmem:[%s4287_s4 + $0xd0] sm:$0xf] }
  0xbc   : > { %v987_v0 = vadd.f32 %v986_v63, %v974_v62  ;;  %v2957_v62 = vld [vmem:[%s4286_s3 + $0xf4] sm:$0xf]  ;;  %v2660_v63 = vor.u32 %v2958_v61, %v2659_v27  ;;  %v2621_v61 = vld [vmem:[%s4286_s3 + $0xa8] sm:$0xf0]  ;;  %v2699_v54 = vld [vmem:[%s4287_s4 + $0x40] sm:$0xf] }
  0xbd   : > { %1548 = vmatpush.bf16.msra.mxu0 %v2588_v42  ;;  %1574 = vmatpush.bf16.msra.mxu2 %v2592_v25  ;;  %v2948_v42 = vld [vmem:[%s4286_s3 + $0xa4] sm:$0xf0]  ;;  %v2947_v25 = vld [vmem:[%s4286_s3 + $0xa4] sm:$0xf] }
  0xbe   : > { %1560 = vmatpush.bf16.msra.mxu1 %v2660_v63  ;;  %v2620_v27 = vor.u32 %v2948_v42, %v2619_v60  ;;  %v2539_v63 = vld [vmem:[%s4286_s3] sm:$0xf]  ;;  %v2701_v60 = vld [vmem:[%s4287_s4 + $0x48] sm:$0xf0]  ;;  %v2773_v42 = vld [vmem:[%s4287_s4 + $0xd8] sm:$0xf0] }
  0xc1   : > { %v975_v1 = vpop.f32.mrf.mxu2  ;;  %1575 = vmatpush.bf16.msra.mxu2 %v2584_v8  ;;  %v2945_v8 = vld [vmem:[%s4286_s3 + $0x94] sm:$0xf] }
  0xc2   : > { %v988_v11 = vpop.f32.mrf.mxu3  ;;  %v2579_v1 = vld [vmem:[%s4286_s3 + $0x50] sm:$0xf] }
  0xc3   : > { %v2580_v4 = vor.u32 %v2938_v2, %v2579_v1  ;;  %v2653_v11 = vld [vmem:[%s4286_s3 + $0xe8] sm:$0xf0]  ;;  %v2927_v1 = vld [vmem:[%s4286_s3 + $0x4] sm:$0xf] }
  0xc5   : > { %1549 = vmatpush.bf16.msra.mxu0 %v2580_v4  ;;  %1576 = vmatpush.bf16.msra.mxu2 %v2576_v21  ;;  %v2974_v21 = vld [vmem:[%s4287_s4 + $0x74] sm:$0xf0] }
  0xca   : > { %v999_v7 = vpop.f32.mrf.mxu0 }
  0xcb   : > { %v1000_v9 = vadd.f32 %v999_v7, %v987_v0  ;;  %v1012_v10 = vpop.f32.mrf.mxu1  ;;  %v2661_v0 = vld [vmem:[%s4286_s3 + $0xf8] sm:$0xf0]  ;;  %v2651_v7 = vld [vmem:[%s4286_s3 + $0xe0] sm:$0xf] }
  0xcc   : > { %v2664_v3 = vor.u32 %v2957_v62, %v2661_v0  ;;  %v2624_v62 = vor.u32 %v2947_v25, %v2621_v61  ;;  %v2928_v0 = vld [vmem:[%s4286_s3 + $0x4] sm:$0xf0]  ;;  %v2763_v61 = vld [vmem:[%s4287_s4 + $0xc0] sm:$0xf] }
  0xcd   : > { %v1013_v15 = vadd.f32 %v1012_v10, %v1000_v9  ;;  %v2956_v9 = vld [vmem:[%s4286_s3 + $0xe4] sm:$0xf0]  ;;  %v2955_v10 = vld [vmem:[%s4286_s3 + $0xe4] sm:$0xf]  ;;  %v2540_v2 = vor.u32 %v2928_v0, %v2539_v63 }
  0xce   : > { %1586 = vmatpush.bf16.msra.mxu3 %v2664_v3  ;;  %v2652_v12 = vor.u32 %v2956_v9, %v2651_v7  ;;  %v2656_v13 = vor.u32 %v2955_v10, %v2653_v11  ;;  %v2541_v3 = vld [vmem:[%s4286_s3 + $0x8] sm:$0xf0]  ;;  %v2946_v7 = vld [vmem:[%s4286_s3 + $0x94] sm:$0xf0]  ;;  %v2613_v10 = vld [vmem:[%s4286_s3 + $0x98] sm:$0xf0] }
  0xcf   : > { %v1101_v19 = vpack.c.bf16 %v1013_v15, %v1013_v15  ;;  %v2544_v5 = vor.u32 %v2927_v1, %v2541_v3  ;;  %v2612_v9 = vor.u32 %v2946_v7, %v2611_v6  ;;  %v2984_v63 = vld [vmem:[%s4287_s4 + $0xc4] sm:$0xf0]  ;;  %v2983_v0 = vld [vmem:[%s4287_s4 + $0xc4] sm:$0xf]  ;;  %v2765_v1 = vld [vmem:[%s4287_s4 + $0xc8] sm:$0xf0] }
  0xd0   : > { %1561 = vmatpush.bf16.msra.mxu1 %v2652_v12  ;;  %v2616_v12 = vor.u32 %v2945_v8, %v2613_v10  ;;  %v2691_v3 = vld [vmem:[%s4287_s4 + $0x30] sm:$0xf]  ;;  %v2965_v6 = vld [vmem:[%s4287_s4 + $0x34] sm:$0xf]  ;;  %v2693_v7 = vld [vmem:[%s4287_s4 + $0x38] sm:$0xf0]  ;;  %v2764_v8 = vor.u32 %v2984_v63, %v2763_v61 }
  0xd1   : > { %1303 = vmatmul.bf16.vlgmr.msrb.gmra.mxu0 %v1101_v19  ;;  %1329 = vmatmul.bf16.vlgmr.msrb.gmra.mxu2 %v1101_v19  ;;  %v2643_v19 = vld [vmem:[%s4286_s3 + $0xd0] sm:$0xf]  ;;  %v2733_v61 = vld [vmem:[%s4287_s4 + $0x88] sm:$0xf0] }
  0xd2   : > { %v1025_v23 = vpop.f32.mrf.mxu2  ;;  %v1001_v28 = vpop.f32.mrf.mxu0  ;;  %v2644_v26 = vor.u32 %v2954_v20, %v2643_v19  ;;  %1587 = vmatpush.bf16.msra.mxu3 %v2656_v13  ;;  %v2603_v13 = vld [vmem:[%s4286_s3 + $0x80] sm:$0xf]  ;;  %v2723_v20 = vld [vmem:[%s4287_s4 + $0x70] sm:$0xf] }
  0xd3   : > { %v1014_v30 = vpop.f32.mrf.mxu1  ;;  %v1038_v31 = vpop.f32.mrf.mxu3  ;;  %v2934_v28 = vld [vmem:[%s4286_s3 + $0x34] sm:$0xf0] }
  0xd4   : > { %v1039_v34 = vadd.f32 %v1038_v31, %v1025_v23  ;;  %v2645_v23 = vld [vmem:[%s4286_s3 + $0xd8] sm:$0xf0]  ;;  %1562 = vmatpush.bf16.msra.mxu1 %v2644_v26  ;;  %v2715_v26 = vld [vmem:[%s4287_s4 + $0x60] sm:$0xf] }
  0xd5   : > { %v2565_v30 = vld [vmem:[%s4286_s3 + $0x38] sm:$0xf0]  ;;  %v2648_v31 = vor.u32 %v2953_v22, %v2645_v23  ;;  %v2973_v22 = vld [vmem:[%s4287_s4 + $0x74] sm:$0xf]  ;;  %v2724_v23 = vor.u32 %v2974_v21, %v2723_v20  ;;  %v2683_v21 = vld [vmem:[%s4287_s4 + $0x20] sm:$0xf] }
  0xd7   : > { %1588 = vmatpush.bf16.msra.mxu3 %v2648_v31  ;;  %v2717_v31 = vld [vmem:[%s4287_s4 + $0x68] sm:$0xf0] }
  0xda   : > { %v1027_v32 = vpop.f32.mrf.mxu2 }
  0xdb   : > { %v1040_v33 = vpop.f32.mrf.mxu3  ;;  %v2635_v32 = vld [vmem:[%s4286_s3 + $0xc0] sm:$0xf] }
  0xdc   : > { %v2952_v33 = vld [vmem:[%s4286_s3 + $0xc4] sm:$0xf0] }
  0xea   : > { %v1051_v35 = vpop.f32.mrf.mxu0 }
  0xeb   : > { %v1064_v37 = vpop.f32.mrf.mxu1  ;;  %v1052_v40 = vadd.f32 %v1051_v35, %v1039_v34  ;;  %v2564_v34 = vor.u32 %v2934_v28, %v2563_v24  ;;  %v2951_v35 = vld [vmem:[%s4286_s3 + $0xc4] sm:$0xf]  ;;  %v2725_v24 = vld [vmem:[%s4287_s4 + $0x78] sm:$0xf0]  ;;  %v2972_v28 = vld [vmem:[%s4287_s4 + $0x64] sm:$0xf0] }
  0xed   : > { %v1065_v41 = vadd.f32 %v1064_v37, %v1052_v40  ;;  %v2637_v37 = vld [vmem:[%s4286_s3 + $0xc8] sm:$0xf0]  ;;  %v2568_v40 = vor.u32 %v2933_v29, %v2565_v30  ;;  %v2728_v29 = vor.u32 %v2973_v22, %v2725_v24  ;;  %v2971_v30 = vld [vmem:[%s4287_s4 + $0x64] sm:$0xf] }
  0xee   : > { %v2963_v22 = vld [vmem:[%s4287_s4 + $0x24] sm:$0xf]  ;;  %v2685_v24 = vld [vmem:[%s4287_s4 + $0x28] sm:$0xf0] }
  0xef   : > { %1577 = vmatpush.bf16.msra.mxu2 %v2568_v40  ;;  %v2720_v40 = vor.u32 %v2971_v30, %v2717_v31  ;;  %v2981_v30 = vld [vmem:[%s4287_s4 + $0xb4] sm:$0xf] }
  0xf2   : > { %v1077_v43 = vpop.f32.mrf.mxu2  ;;  %v1053_v46 = vpop.f32.mrf.mxu0 }
  0xf3   : > { %v1078_v44 = vadd.f32 %v1077_v43, %v1065_v41  ;;  %v1090_v45 = vpop.f32.mrf.mxu3  ;;  %v1066_v47 = vpop.f32.mrf.mxu1  ;;  %v2555_v41 = vld [vmem:[%s4286_s3 + $0x20] sm:$0xf]  ;;  %v2932_v43 = vld [vmem:[%s4286_s3 + $0x24] sm:$0xf0]  ;;  %v2557_v46 = vld [vmem:[%s4286_s3 + $0x28] sm:$0xf0] }
  0xf4   : > { %v2640_v47 = vor.u32 %v2951_v35, %v2637_v37  ;;  %v2989_v35 = vld [vmem:[%s4287_s4 + $0xf4] sm:$0xf]  ;;  %v2789_v37 = vld [vmem:[%s4287_s4 + $0xf8] sm:$0xf0] }
  0xf5   : > { %v1091_v36 = vadd.f32 %v1090_v45, %v1078_v44  ;;  %v2636_v44 = vor.u32 %v2952_v33, %v2635_v32  ;;  %v2931_v45 = vld [vmem:[%s4286_s3 + $0x24] sm:$0xf]  ;;  %v2787_v32 = vld [vmem:[%s4287_s4 + $0xf0] sm:$0xf]  ;;  %v2716_v33 = vor.u32 %v2972_v28, %v2715_v26  ;;  %v2688_v26 = vor.u32 %v2963_v22, %v2685_v24 }
  0xf6   : > { %1589 = vmatpush.bf16.msra.mxu3 %v2640_v47  ;;  %v2709_v47 = vld [vmem:[%s4287_s4 + $0x58] sm:$0xf0]  ;;  %v2755_v28 = vld [vmem:[%s4287_s4 + $0xb0] sm:$0xf] }
  0xf7   : > { %v1096_v48 = vrot.slane %v1091_v36, 4  ;;  %v1102_v49 = vpack.c.bf16 %v1091_v36, %v1091_v36  ;;  %v2627_v36 = vld [vmem:[%s4286_s3 + $0xb0] sm:$0xf]  ;;  %1563 = vmatpush.bf16.msra.mxu1 %v2636_v44 }
  0xf8   : > { %v2707_v44 = vld [vmem:[%s4287_s4 + $0x50] sm:$0xf] }
  0xf9   : > { %v1098_v50 = vsel %vm1097_vm0, %v1013_v15, %v1096_v48  ;;  %1316 = vmatmul.bf16.vlgmr.msrb.gmra.mxu1 %v1102_v49  ;;  %1342 = vmatmul.bf16.vlgmr.msrb.gmra.mxu3 %v1102_v49  ;;  %v2936_v15 = vld [vmem:[%s4286_s3 + $0x44] sm:$0xf0]  ;;  %v2950_v48 = vld [vmem:[%s4286_s3 + $0xb4] sm:$0xf0]  ;;  %v2556_v49 = vor.u32 %v2932_v43, %v2555_v41  ;;  %v2792_v43 = vor.u32 %v2989_v35, %v2789_v37 }
  0xfa   : > { %1100 = vst [vmem:[%s327_s29] sm:$0xff] %v1098_v50  ;;  %v1079_v51 = vpop.f32.mrf.mxu2  ;;  %v2572_v17 = vor.u32 %v2936_v15, %v2571_v14  ;;  %v2949_v50 = vld [vmem:[%s4286_s3 + $0xb4] sm:$0xf]  ;;  %v2628_v55 = vor.u32 %v2950_v48, %v2627_v36  ;;  %v2944_v14 = vld [vmem:[%s4286_s3 + $0x84] sm:$0xf0]  ;;  %v2943_v15 = vld [vmem:[%s4286_s3 + $0x84] sm:$0xf] }
  0xfb   : > { %v1092_v52 = vpop.f32.mrf.mxu3  ;;  %v2629_v51 = vld [vmem:[%s4286_s3 + $0xb8] sm:$0xf0]  ;;  %v2604_v16 = vor.u32 %v2944_v14, %v2603_v13  ;;  %v2779_v36 = vld [vmem:[%s4287_s4 + $0xe0] sm:$0xf]  ;;  %v2988_v48 = vld [vmem:[%s4287_s4 + $0xe4] sm:$0xf0] }
  0xfc   : > { %1550 = vmatpush.bf16.msra.mxu0 %v2572_v17  ;;  %v2560_v52 = vor.u32 %v2931_v45, %v2557_v46  ;;  %v2632_v58 = vor.u32 %v2949_v50, %v2629_v51  ;;  %1564 = vmatpush.bf16.msra.mxu1 %v2628_v55  ;;  %v2605_v17 = vld [vmem:[%s4286_s3 + $0x88] sm:$0xf0]  ;;  %v2970_v45 = vld [vmem:[%s4287_s4 + $0x54] sm:$0xf0]  ;;  %v2969_v46 = vld [vmem:[%s4287_s4 + $0x54] sm:$0xf] }
  0xfd   : > { %v2608_v18 = vor.u32 %v2943_v15, %v2605_v17  ;;  %v2987_v50 = vld [vmem:[%s4287_s4 + $0xe4] sm:$0xf]  ;;  %v2781_v51 = vld [vmem:[%s4287_s4 + $0xe8] sm:$0xf0]  ;;  %v2968_v55 = vld [vmem:[%s4287_s4 + $0x44] sm:$0xf0]  ;;  %v2712_v56 = vor.u32 %v2969_v46, %v2709_v47 }
  0xfe   : > { %1578 = vmatpush.bf16.msra.mxu2 %v2560_v52  ;;  %1590 = vmatpush.bf16.msra.mxu3 %v2632_v58  ;;  %v2708_v52 = vor.u32 %v2970_v45, %v2707_v44  ;;  %v2784_v53 = vor.u32 %v2987_v50, %v2781_v51  ;;  %v2986_v58 = vld [vmem:[%s4287_s4 + $0xd4] sm:$0xf0]  ;;  %v2747_v44 = vld [vmem:[%s4287_s4 + $0xa0] sm:$0xf]  ;;  %v2980_v45 = vld [vmem:[%s4287_s4 + $0xa4] sm:$0xf0] }
  0xff   : > { %v2772_v25 = vor.u32 %v2986_v58, %v2771_v57  ;;  %v2979_v46 = vld [vmem:[%s4287_s4 + $0xa4] sm:$0xf]  ;;  %v2748_v47 = vor.u32 %v2980_v45, %v2747_v44  ;;  %v2960_v50 = vld [vmem:[%s4287_s4 + $0x4] sm:$0xf0]  ;;  %v2977_v57 = vld [vmem:[%s4287_s4 + $0x94] sm:$0xf] }
 0x100   : > { %1551 = vmatpush.bf16.msra.mxu0 %v2564_v34  ;;  %1565 = vmatpush.bf16.msra.mxu1 %v2620_v27  ;;  %v2990_v34 = vld [vmem:[%s4287_s4 + $0xf4] sm:$0xf0]  ;;  %v2959_v51 = vld [vmem:[%s4287_s4 + $0x4] sm:$0xf] }
 0x101   : > { %v2788_v41 = vor.u32 %v2990_v34, %v2787_v32  ;;  %v2757_v32 = vld [vmem:[%s4287_s4 + $0xb8] sm:$0xf0]  ;;  %v2962_v34 = vld [vmem:[%s4287_s4 + $0x14] sm:$0xf0] }
 0x102   : > { %1579 = vmatpush.bf16.msra.mxu2 %v2552_v39  ;;  %1591 = vmatpush.bf16.msra.mxu3 %v2624_v62  ;;  %v2967_v39 = vld [vmem:[%s4287_s4 + $0x44] sm:$0xf]  ;;  %v2700_v62 = vor.u32 %v2968_v55, %v2699_v54  ;;  %v2760_v35 = vor.u32 %v2981_v30, %v2757_v32  ;;  %v2739_v55 = vld [vmem:[%s4287_s4 + $0x90] sm:$0xf] }
 0x104   : > { %1552 = vmatpush.bf16.msra.mxu0 %v2556_v49  ;;  %1566 = vmatpush.bf16.msra.mxu1 %v2612_v9  ;;  %v2780_v49 = vor.u32 %v2988_v48, %v2779_v36  ;;  %v2768_v9 = vor.u32 %v2983_v0, %v2765_v1  ;;  %v2749_v36 = vld [vmem:[%s4287_s4 + $0xa8] sm:$0xf0] }
 0x105   : > { %v2752_v48 = vor.u32 %v2979_v46, %v2749_v36 }
 0x106   : > { %1580 = vmatpush.bf16.msra.mxu2 %v2544_v5  ;;  %1592 = vmatpush.bf16.msra.mxu3 %v2616_v12  ;;  %v2966_v5 = vld [vmem:[%s4287_s4 + $0x34] sm:$0xf0] }
 0x107   : > { %v2692_v10 = vor.u32 %v2966_v5, %v2691_v3 }
 0x108   : > { %1553 = vmatpush.bf16.msra.mxu0 %v2548_v38  ;;  %1567 = vmatpush.bf16.msra.mxu1 %v2604_v16  ;;  %v2985_v38 = vld [vmem:[%s4287_s4 + $0xd4] sm:$0xf] }
 0x109   : > { %v2776_v27 = vor.u32 %v2985_v38, %v2773_v42  ;;  %v2741_v38 = vld [vmem:[%s4287_s4 + $0x98] sm:$0xf0]  ;;  %v2976_v42 = vld [vmem:[%s4287_s4 + $0x84] sm:$0xf0] }
 0x10a   : > { %1593 = vmatpush.bf16.msra.mxu3 %v2608_v18  ;;  %1825 = vmatpush.bf16.msrb.mxu2 %v2728_v29  ;;  %v2982_v29 = vld [vmem:[%s4287_s4 + $0xb4] sm:$0xf0] }
 0x10b   : > { %v2756_v31 = vor.u32 %v2982_v29, %v2755_v28 }
 0x10c   : > { %1554 = vmatpush.bf16.msra.mxu0 %v2540_v2  ;;  %1812 = vmatpush.bf16.msrb.mxu1 %v2788_v41  ;;  %v2704_v2 = vor.u32 %v2967_v39, %v2701_v60  ;;  %v2677_v41 = vld [vmem:[%s4287_s4 + $0x18] sm:$0xf0]  ;;  %v2744_v39 = vor.u32 %v2977_v57, %v2741_v38  ;;  %v2731_v60 = vld [vmem:[%s4287_s4 + $0x80] sm:$0xf] }
 0x10e   : > { %1838 = vmatpush.bf16.msrb.mxu3 %v2792_v43  ;;  %1826 = vmatpush.bf16.msrb.mxu2 %v2720_v40  ;;  %v2961_v40 = vld [vmem:[%s4287_s4 + $0x14] sm:$0xf] }
 0x10f   : > { %v2680_v43 = vor.u32 %v2961_v40, %v2677_v41 }
 0x110   : > { %1799 = vmatpush.bf16.msrb.mxu0 %v2724_v23  ;;  %1813 = vmatpush.bf16.msrb.mxu1 %v2780_v49  ;;  %v2667_v49 = vld [vmem:[%s4287_s4] sm:$0xf] }
 0x112   : > { %1839 = vmatpush.bf16.msrb.mxu3 %v2784_v53  ;;  %1827 = vmatpush.bf16.msrb.mxu2 %v2712_v56  ;;  %v2669_v53 = vld [vmem:[%s4287_s4 + $0x8] sm:$0xf0]  ;;  %v2978_v56 = vld [vmem:[%s4287_s4 + $0x94] sm:$0xf0] }
 0x113   : > { %v2672_v54 = vor.u32 %v2959_v51, %v2669_v53  ;;  %v2740_v58 = vor.u32 %v2978_v56, %v2739_v55 }
 0x114   : > { %1800 = vmatpush.bf16.msrb.mxu0 %v2716_v33  ;;  %1814 = vmatpush.bf16.msrb.mxu1 %v2772_v25  ;;  %v2675_v33 = vld [vmem:[%s4287_s4 + $0x10] sm:$0xf]  ;;  %v2975_v25 = vld [vmem:[%s4287_s4 + $0x84] sm:$0xf] }
 0x115   : > { %v2676_v37 = vor.u32 %v2962_v34, %v2675_v33 }
 0x116   : > { %1840 = vmatpush.bf16.msrb.mxu3 %v2776_v27  ;;  %1828 = vmatpush.bf16.msrb.mxu2 %v2704_v2  ;;  %v2732_v27 = vor.u32 %v2976_v42, %v2731_v60 }
 0x118   : > { %1801 = vmatpush.bf16.msrb.mxu0 %v2708_v52  ;;  %1815 = vmatpush.bf16.msrb.mxu1 %v2764_v8  ;;  %v2668_v52 = vor.u32 %v2960_v50, %v2667_v49 }
 0x11a   : > { %1841 = vmatpush.bf16.msrb.mxu3 %v2768_v9 }
 0x11c   : > { %1802 = vmatpush.bf16.msrb.mxu0 %v2700_v62  ;;  %1816 = vmatpush.bf16.msrb.mxu1 %v2756_v31  ;;  %v2736_v62 = vor.u32 %v2975_v25, %v2733_v61 }
 0x11e   : > { %1842 = vmatpush.bf16.msrb.mxu3 %v2760_v35 }
 0x120   : > { %1803 = vmatpush.bf16.msrb.mxu0 %v2692_v10  ;;  %1817 = vmatpush.bf16.msrb.mxu1 %v2748_v47 }
 0x122   : > { %1843 = vmatpush.bf16.msrb.mxu3 %v2752_v48 }
 0x124   : > { %1818 = vmatpush.bf16.msrb.mxu1 %v2740_v58 }
 0x126   : > { %1844 = vmatpush.bf16.msrb.mxu3 %v2744_v39 }
 0x128   : > { %1819 = vmatpush.bf16.msrb.mxu1 %v2732_v27 }
 0x12a   : > { %1845 = vmatpush.bf16.msrb.mxu3 %v2736_v62 }
 0x14e   : > { %v4019_v59 = vpop.f32.mrf.mxu0 }
 0x154   : > { %v4045_v4 = vpop.f32.mrf.mxu2 }
 0x156   : > { %v1306_v11 = vpop.f32.mrf.mxu0 }
 0x157   : > { %v2696_v11 = vor.u32 %v2965_v6, %v2693_v7 }
 0x159   : > { %1829 = vmatpush.bf16.msrb.mxu2 %v2696_v11 }
 0x15c   : > { %v1332_v19 = vpop.f32.mrf.mxu2 }
 0x15d   : > { %1830 = vmatpush.bf16.msrb.mxu2 %v2688_v26 }
 0x161   : > { %1831 = vmatpush.bf16.msrb.mxu2 %v2680_v43 }
 0x165   : > { %1832 = vmatpush.bf16.msrb.mxu2 %v2672_v54 }
 0x176   : > { %v1317_v12 = vpop.f32.mrf.mxu1 }
 0x177   : > { %v1318_v13 = vadd.f32 %v1317_v12, %v4019_v59 }
 0x179   : > { %v1353_v14 = vpack.c.bf16 %v1318_v13, %v1318_v13 }
 0x17b   : > { %1555 = vmatmul.bf16.vlgmr.msra.gmra.mxu0 %v1353_v14  ;;  %1581 = vmatmul.bf16.vlgmr.msra.gmra.mxu2 %v1353_v14 }
 0x17c   : > { %v1343_v15 = vpop.f32.mrf.mxu3 }
 0x17d   : > { %v1344_v16 = vadd.f32 %v1343_v15, %v4045_v4  ;;  %v2964_v4 = vld [vmem:[%s4287_s4 + $0x24] sm:$0xf0] }
 0x17e   : > { %v1319_v17 = vpop.f32.mrf.mxu1  ;;  %v2684_v23 = vor.u32 %v2964_v4, %v2683_v21 }
 0x17f   : > { %v1349_v18 = vrot.slane %v1344_v16, 4  ;;  %v1354_v19 = vpack.c.bf16 %v1344_v16, %v1344_v16 }
 0x180   : > { %1804 = vmatpush.bf16.msrb.mxu0 %v2684_v23 }
 0x181   : > { %v1350_v20 = vsel %vm1097_vm0, %v1318_v13, %v1349_v18  ;;  %1568 = vmatmul.bf16.vlgmr.msra.gmra.mxu1 %v1354_v19  ;;  %1594 = vmatmul.bf16.vlgmr.msra.gmra.mxu3 %v1354_v19 }
 0x182   : > { %1352 = vst [vmem:[%s332_s9] sm:$0xff] %v1350_v20 }
 0x184   : > { %v1345_v59 = vpop.f32.mrf.mxu3  ;;  %1805 = vmatpush.bf16.msrb.mxu0 %v2676_v37 }
 0x188   : > { %1806 = vmatpush.bf16.msrb.mxu0 %v2668_v52 }
 0x1f8   : > { %v1556_v63 = vpop.f32.mrf.mxu0 }
 0x1fe   : > { %v1569_v0 = vpop.f32.mrf.mxu1  ;;  %v1582_v1 = vpop.f32.mrf.mxu2 }
 0x1ff   : > { %v1570_v2 = vadd.f32 %v1569_v0, %v1556_v63 }
 0x200   : > { %v1558_v3 = vpop.f32.mrf.mxu0 }
 0x201   : > { %v1605_v5 = vpack.c.bf16 %v1570_v2, %v1570_v2 }
 0x203   : > { %1807 = vmatmul.bf16.vlgmr.msrb.gmra.mxu0 %v1605_v5  ;;  %1833 = vmatmul.bf16.vlgmr.msrb.gmra.mxu2 %v1605_v5 }
 0x204   : > { %v1595_v6 = vpop.f32.mrf.mxu3 }
 0x205   : > { %v1596_v7 = vadd.f32 %v1595_v6, %v1582_v1 }
 0x206   : > { %v1571_v8 = vpop.f32.mrf.mxu1  ;;  %v1584_v9 = vpop.f32.mrf.mxu2 }
 0x207   : > { %v1601_v10 = vrot.slane %v1596_v7, 4  ;;  %v1606_v11 = vpack.c.bf16 %v1596_v7, %v1596_v7 }
 0x209   : > { %v1602_v12 = vsel %vm1097_vm0, %v1570_v2, %v1601_v10  ;;  %1820 = vmatmul.bf16.vlgmr.msrb.gmra.mxu1 %v1606_v11  ;;  %1846 = vmatmul.bf16.vlgmr.msrb.gmra.mxu3 %v1606_v11 }
 0x20a   : > { %1604 = vst [vmem:[%s337_s28] sm:$0xff] %v1602_v12 }
 0x20c   : > { %v1597_v13 = vpop.f32.mrf.mxu3 }
 0x280   : > { %v1808_v14 = vpop.f32.mrf.mxu0 }
 0x286   : > { %v1821_v15 = vpop.f32.mrf.mxu1  ;;  %v1834_v16 = vpop.f32.mrf.mxu2 }
 0x287   : > { %v1822_v21 = vadd.f32 %v1821_v15, %v1808_v14 }
 0x288   : > { %v1810_v17 = vpop.f32.mrf.mxu0 }
 0x28c   : > { %v1847_v18 = vpop.f32.mrf.mxu3 }
 0x28d   : > { %v1848_v19 = vadd.f32 %v1847_v18, %v1834_v16 }
 0x28e   : > { %v1823_v20 = vpop.f32.mrf.mxu1  ;;  %v1836_v59 = vpop.f32.mrf.mxu2 }
 0x28f   : > { %v1853_v4 = vrot.slane %v1848_v19, 4 }
 0x291   : > { %v1854_v22 = vsel %vm1097_vm0, %v1822_v21, %v1853_v4 }
 0x292   : > { %1856 = vst [vmem:[%s342_s11] sm:$0xff] %v1854_v22 }
 0x294   : > { %v1849_v23 = vpop.f32.mrf.mxu3 }
 0x295 PF: > { %s19_s27 = sadd.s32 1, %s3006_s27  }
 0x296   : > { %p16_p4 = scmp.ge.s32.totalorder %s19_s27, 4  }
 0x298   :  { %18 = sbr.rel (!%p16_p4) target bundleno = 1 (0x1), region = 107 }

</bundles_post_ra>
